<compile_context>
chip_gen: v7x
topology: tpu7x:2x2x1
jax: 0.10.0
libtpu: 0.0.40
codegen_flags: <defaults>
</compile_context>

<pallas_src>
import jax
import jax.numpy as jnp
import numpy as np
from jax.experimental import pallas as pl
from jax.experimental.pallas import tpu as pltpu


# ------------------------------ fused kernel --------------------------------

def _fused_forward_kernel(x_ref, conv_w_ref, conv_b_ref, wbig_ref, bbig_ref,
                          fc_w_ref, fc_b_ref, o_ref, feat_ref):
    # x_ref:      (b*f, Cin, HW)   frames in NCHW layout with HW flattened (lane dim = HW)
    # conv_w_ref: (C, Cin)         conv_b_ref: (C, 1)
    # wbig_ref:   (HW, HW)         kron(I_{HW//C}, agg_w.T)   (block-diagonal)
    # bbig_ref:   (1, HW)          agg_b tiled HW//C times
    # fc_w_ref:   (classes, C)     fc_b_ref: (classes, 1)
    # o_ref:      (classes, 1)     logits as a column (reshaped to (1, classes) in wrapper)
    # feat_ref:   VMEM scratch (f*C, HW): backbone features of the current clip
    BF, _, HW = x_ref.shape
    C = conv_w_ref.shape[0]
    f = feat_ref.shape[0] // C
    b = BF // f

    pooled_sum = jnp.zeros((C, 1), dtype=jnp.float32)

    for i in range(b):                                   # static unroll over batch samples
        # ---- synthetic backbone: 1x1 conv + ReLU, kept in (C, HW) layout ----
        for j in range(f):
            y = jnp.dot(conv_w_ref[...], x_ref[i * f + j],
                        preferred_element_type=jnp.float32) + conv_b_ref[...]
            feat_ref[j * C:(j + 1) * C, :] = jnp.maximum(y, 0.0)

        feat2d = feat_ref[...]                           # (f*C, HW)

        # ---- wt = relu(Linear after torch's contiguous .view(b,f,h,w,c)) ----
        # view + C->C Linear + view-back == matmul over the last (HW) axis with a
        # block-diagonal kron(I, W^T) weight -> one big MXU matmul, no relayouts.
        wt2d = jnp.dot(feat2d, wbig_ref[...],
                       preferred_element_type=jnp.float32) + bbig_ref[...]
        wt2d = jnp.maximum(wt2d, 0.0)                    # (f*C, HW)

        # ---- softmax over frames + weighted sum over frames + spatial avg pool ----
        wt_j = [wt2d[j * C:(j + 1) * C, :] for j in range(f)]
        ft_j = [feat2d[j * C:(j + 1) * C, :] for j in range(f)]
        m = wt_j[0]
        for j in range(1, f):
            m = jnp.maximum(m, wt_j[j])
        denom = jnp.zeros((C, HW), jnp.float32)
        numer = jnp.zeros((C, HW), jnp.float32)
        for j in range(f):
            e = jnp.exp(wt_j[j] - m)
            denom = denom + e
            numer = numer + e * ft_j[j]
        agg = numer / denom                              # one divide per (C, HW)
        pooled_sum = pooled_sum + jnp.sum(agg, axis=-1, keepdims=True)   # (C, 1)

    # ---- mean over batch & spatial positions, then fc head ----
    mean_feat = pooled_sum * (1.0 / (b * HW))            # (C, 1)
    o_ref[...] = jnp.dot(fc_w_ref[...], mean_feat,
                         preferred_element_type=jnp.float32) + fc_b_ref[...]


# -------------------------------- wrapper ------------------------------------

def model_forward(x, params):
    """x: (b, f, c, h, w) float32 -> (1, classes) float32."""
    b, f, c, h, w = x.shape
    BF, HW = b * f, h * w
    conv_w, conv_b = params["conv_w"], params["conv_b"]
    agg_w, agg_b = params["agg_w"], params["agg_b"]
    fc_w, fc_b = params["fc_w"], params["fc_b"]
    C = conv_w.shape[0]
    classes = fc_w.shape[0]
    if HW % C != 0:
        raise ValueError("fused kernel requires C | H*W (block-diagonal view trick)")

    x2 = x.reshape(BF, c, HW)
    # Block-diagonal realization of the contiguous-view Linear (built once, 256 KiB).
    wbig = jnp.kron(jnp.eye(HW // C, dtype=jnp.float32), agg_w.T)      # (HW, HW)
    bbig = jnp.tile(agg_b, HW // C).reshape(1, HW)                     # (1, HW)

    flops = (2 * BF * C * c * HW            # backbone 1x1 conv
             + 2 * BF * C * HW * HW         # block-diagonal channel Linear
             + 8 * BF * C * HW              # softmax / weighted sum / pooling
             + 2 * classes * C)             # fc head
    bytes_accessed = 4 * (x2.size + conv_w.size + conv_b.size + wbig.size
                          + bbig.size + fc_w.size + fc_b.size + classes)
    cost = pl.CostEstimate(flops=flops, transcendentals=BF * C * HW,
                           bytes_accessed=bytes_accessed)

    out = pl.pallas_call(
        _fused_forward_kernel,
        out_shape=jax.ShapeDtypeStruct((classes, 1), jnp.float32),
        scratch_shapes=[pltpu.VMEM((f * C, HW), jnp.float32)],
        cost_estimate=cost,
    )(x2, conv_w, conv_b.reshape(C, 1), wbig, bbig, fc_w, fc_b.reshape(classes, 1))
    # (classes, 1) -> (1, classes) is flat-order preserving: free reshape in XLA.
    return out.reshape(1, classes)


# ------------------------------- reference -----------------------------------

def reference_forward(x, params):
    b, f, c, h, w = x.shape
    BF = b * f
    xb = x.reshape(BF, c, h, w)
    feat = jnp.einsum("nchw,oc->nohw", xb, params["conv_w"]) + params["conv_b"][None, :, None, None]
    feat = jnp.maximum(feat, 0.0)
    C = feat.shape[1]
    inp = feat.reshape(b, f, h, w, C)                           # torch .view (contiguous reinterpret)
    wt = jnp.maximum(inp @ params["agg_w"].T + params["agg_b"], 0.0)
    wt = wt.reshape(b, f, C, h, w)                              # torch .view
    wt = jax.nn.softmax(wt, axis=1)
    agg = jnp.sum(wt * feat.reshape(b, f, C, h, w), axis=1)     # (b, C, h, w)
    pooled = jnp.mean(agg, axis=(2, 3))                         # (b, C)
    m = jnp.mean(pooled, axis=0, keepdims=True)                 # (1, C)
    return m @ params["fc_w"].T + params["fc_b"][None, :]


# --------------------------------- main ---------------------------------------

if __name__ == "__main__":
    b, f, c, h, w = 2, 4, 4, 16, 16
    C_feat, classes = 32, 10

    key = jax.random.PRNGKey(0)
    k_x, k_cw, k_cb, k_aw, k_ab, k_fw, k_fb = jax.random.split(key, 7)

    x = jax.random.normal(k_x, (b, f, c, h, w), dtype=jnp.float32)
    params = {
        "conv_w": jax.random.normal(k_cw, (C_feat, c), dtype=jnp.float32) * 0.1,
        "conv_b": jax.random.normal(k_cb, (C_feat,), dtype=jnp.float32) * 0.1,
        "agg_w": jax.random.normal(k_aw, (C_feat, C_feat), dtype=jnp.float32) * 0.1,
        "agg_b": jax.random.normal(k_ab, (C_feat,), dtype=jnp.float32) * 0.1,
        "fc_w": jax.random.normal(k_fw, (classes, C_feat), dtype=jnp.float32) * 0.1,
        "fc_b": jax.random.normal(k_fb, (classes,), dtype=jnp.float32) * 0.1,
    }

    out = jax.block_until_ready(jax.jit(model_forward)(x, params))
    ref = jax.block_until_ready(reference_forward(x, params))

    assert out.shape == (1, classes), out.shape
    np.testing.assert_allclose(np.asarray(out), np.asarray(ref), rtol=1e-4, atol=1e-4)
    print("KERNEL_OK")
</pallas_src>

<mosaic_0001>
module attributes {stable_mosaic.version = 11 : i64} {
  func.func @_fused_forward_kernel(%arg0: memref<8x4x256xf32, #tpu.memory_space<vmem>>, %arg1: memref<32x4xf32, #tpu.memory_space<vmem>>, %arg2: memref<32x1xf32, #tpu.memory_space<vmem>>, %arg3: memref<256x256xf32, #tpu.memory_space<vmem>>, %arg4: memref<1x256xf32, #tpu.memory_space<vmem>>, %arg5: memref<10x32xf32, #tpu.memory_space<vmem>>, %arg6: memref<10x1xf32, #tpu.memory_space<vmem>>, %arg7: memref<10x1xf32, #tpu.memory_space<vmem>>, %arg8: memref<128x256xf32, #tpu.memory_space<vmem>>) attributes {dimension_semantics = [], scalar_prefetch = 0 : i64, scratch_operands = 1 : i64, tpu.core_type = #tpu.core_type<tc>} {
    %cst = arith.constant 0.000000e+00 : f32
    %0 = vector.broadcast %cst : f32 to vector<32x1xf32>
    %c0 = arith.constant 0 : index
    %c0_0 = arith.constant 0 : index
    %1 = vector.load %arg1[%c0, %c0_0] : memref<32x4xf32, #tpu.memory_space<vmem>>, vector<32x4xf32>
    %c0_1 = arith.constant 0 : index
    %c0_2 = arith.constant 0 : index
    %c0_3 = arith.constant 0 : index
    %2 = vector.load %arg0[%c0_1, %c0_2, %c0_3] : memref<8x4x256xf32, #tpu.memory_space<vmem>>, vector<1x4x256xf32>
    %3 = vector.shape_cast %2 : vector<1x4x256xf32> to vector<4x256xf32>
    %cst_4 = arith.constant dense<0.000000e+00> : vector<32x256xf32>
    %4 = tpu.matmul %1, %3, %cst_4 {dimension_numbers = #tpu.dot_dimension_numbers<[1], [0], [0], [1], [0, 0, 1, 1], [], []>} : vector<32x4xf32>, vector<4x256xf32>, vector<32x256xf32> -> vector<32x256xf32>
    %c0_5 = arith.constant 0 : index
    %c0_6 = arith.constant 0 : index
    %5 = vector.load %arg2[%c0_5, %c0_6] : memref<32x1xf32, #tpu.memory_space<vmem>>, vector<32x1xf32>
    %6 = vector.broadcast %5 : vector<32x1xf32> to vector<32x256xf32>
    %7 = arith.addf %4, %6 : vector<32x256xf32>
    %cst_7 = arith.constant 0.000000e+00 : f32
    %8 = vector.broadcast %cst_7 : f32 to vector<32x256xf32>
    %9 = arith.maximumf %7, %8 : vector<32x256xf32>
    %c0_8 = arith.constant 0 : index
    %c0_9 = arith.constant 0 : index
    %10 = vector.load %arg8[%c0_8, %c0_9] : memref<128x256xf32, #tpu.memory_space<vmem>>, vector<32x256xf32>
    tpu.vector_store %arg8[%c0_8, %c0_9], %9 {strides = array<i32>} : memref<128x256xf32, #tpu.memory_space<vmem>>, vector<32x256xf32>,
    %c0_10 = arith.constant 0 : index
    %c0_11 = arith.constant 0 : index
    %11 = vector.load %arg1[%c0_10, %c0_11] : memref<32x4xf32, #tpu.memory_space<vmem>>, vector<32x4xf32>
    %c1 = arith.constant 1 : index
    %c0_12 = arith.constant 0 : index
    %c0_13 = arith.constant 0 : index
    %12 = vector.load %arg0[%c1, %c0_12, %c0_13] : memref<8x4x256xf32, #tpu.memory_space<vmem>>, vector<1x4x256xf32>
    %13 = vector.shape_cast %12 : vector<1x4x256xf32> to vector<4x256xf32>
    %cst_14 = arith.constant dense<0.000000e+00> : vector<32x256xf32>
    %14 = tpu.matmul %11, %13, %cst_14 {dimension_numbers = #tpu.dot_dimension_numbers<[1], [0], [0], [1], [0, 0, 1, 1], [], []>} : vector<32x4xf32>, vector<4x256xf32>, vector<32x256xf32> -> vector<32x256xf32>
    %c0_15 = arith.constant 0 : index
    %c0_16 = arith.constant 0 : index
    %15 = vector.load %arg2[%c0_15, %c0_16] : memref<32x1xf32, #tpu.memory_space<vmem>>, vector<32x1xf32>
    %16 = vector.broadcast %15 : vector<32x1xf32> to vector<32x256xf32>
    %17 = arith.addf %14, %16 : vector<32x256xf32>
    %cst_17 = arith.constant 0.000000e+00 : f32
    %18 = vector.broadcast %cst_17 : f32 to vector<32x256xf32>
    %19 = arith.maximumf %17, %18 : vector<32x256xf32>
    %c32 = arith.constant 32 : index
    %c0_18 = arith.constant 0 : index
    %20 = vector.load %arg8[%c32, %c0_18] : memref<128x256xf32, #tpu.memory_space<vmem>>, vector<32x256xf32>
    tpu.vector_store %arg8[%c32, %c0_18], %19 {strides = array<i32>} : memref<128x256xf32, #tpu.memory_space<vmem>>, vector<32x256xf32>,
    %c0_19 = arith.constant 0 : index
    %c0_20 = arith.constant 0 : index
    %21 = vector.load %arg1[%c0_19, %c0_20] : memref<32x4xf32, #tpu.memory_space<vmem>>, vector<32x4xf32>
    %c2 = arith.constant 2 : index
    %c0_21 = arith.constant 0 : index
    %c0_22 = arith.constant 0 : index
    %22 = vector.load %arg0[%c2, %c0_21, %c0_22] : memref<8x4x256xf32, #tpu.memory_space<vmem>>, vector<1x4x256xf32>
    %23 = vector.shape_cast %22 : vector<1x4x256xf32> to vector<4x256xf32>
    %cst_23 = arith.constant dense<0.000000e+00> : vector<32x256xf32>
    %24 = tpu.matmul %21, %23, %cst_23 {dimension_numbers = #tpu.dot_dimension_numbers<[1], [0], [0], [1], [0, 0, 1, 1], [], []>} : vector<32x4xf32>, vector<4x256xf32>, vector<32x256xf32> -> vector<32x256xf32>
    %c0_24 = arith.constant 0 : index
    %c0_25 = arith.constant 0 : index
    %25 = vector.load %arg2[%c0_24, %c0_25] : memref<32x1xf32, #tpu.memory_space<vmem>>, vector<32x1xf32>
    %26 = vector.broadcast %25 : vector<32x1xf32> to vector<32x256xf32>
    %27 = arith.addf %24, %26 : vector<32x256xf32>
    %cst_26 = arith.constant 0.000000e+00 : f32
    %28 = vector.broadcast %cst_26 : f32 to vector<32x256xf32>
    %29 = arith.maximumf %27, %28 : vector<32x256xf32>
    %c64 = arith.constant 64 : index
    %c0_27 = arith.constant 0 : index
    %30 = vector.load %arg8[%c64, %c0_27] : memref<128x256xf32, #tpu.memory_space<vmem>>, vector<32x256xf32>
    tpu.vector_store %arg8[%c64, %c0_27], %29 {strides = array<i32>} : memref<128x256xf32, #tpu.memory_space<vmem>>, vector<32x256xf32>,
    %c0_28 = arith.constant 0 : index
    %c0_29 = arith.constant 0 : index
    %31 = vector.load %arg1[%c0_28, %c0_29] : memref<32x4xf32, #tpu.memory_space<vmem>>, vector<32x4xf32>
    %c3 = arith.constant 3 : index
    %c0_30 = arith.constant 0 : index
    %c0_31 = arith.constant 0 : index
    %32 = vector.load %arg0[%c3, %c0_30, %c0_31] : memref<8x4x256xf32, #tpu.memory_space<vmem>>, vector<1x4x256xf32>
    %33 = vector.shape_cast %32 : vector<1x4x256xf32> to vector<4x256xf32>
    %cst_32 = arith.constant dense<0.000000e+00> : vector<32x256xf32>
    %34 = tpu.matmul %31, %33, %cst_32 {dimension_numbers = #tpu.dot_dimension_numbers<[1], [0], [0], [1], [0, 0, 1, 1], [], []>} : vector<32x4xf32>, vector<4x256xf32>, vector<32x256xf32> -> vector<32x256xf32>
    %c0_33 = arith.constant 0 : index
    %c0_34 = arith.constant 0 : index
    %35 = vector.load %arg2[%c0_33, %c0_34] : memref<32x1xf32, #tpu.memory_space<vmem>>, vector<32x1xf32>
    %36 = vector.broadcast %35 : vector<32x1xf32> to vector<32x256xf32>
    %37 = arith.addf %34, %36 : vector<32x256xf32>
    %cst_35 = arith.constant 0.000000e+00 : f32
    %38 = vector.broadcast %cst_35 : f32 to vector<32x256xf32>
    %39 = arith.maximumf %37, %38 : vector<32x256xf32>
    %c96 = arith.constant 96 : index
    %c0_36 = arith.constant 0 : index
    %40 = vector.load %arg8[%c96, %c0_36] : memref<128x256xf32, #tpu.memory_space<vmem>>, vector<32x256xf32>
    tpu.vector_store %arg8[%c96, %c0_36], %39 {strides = array<i32>} : memref<128x256xf32, #tpu.memory_space<vmem>>, vector<32x256xf32>,
    %c0_37 = arith.constant 0 : index
    %c0_38 = arith.constant 0 : index
    %41 = vector.load %arg8[%c0_37, %c0_38] : memref<128x256xf32, #tpu.memory_space<vmem>>, vector<128x256xf32>
    %c0_39 = arith.constant 0 : index
    %c0_40 = arith.constant 0 : index
    %42 = vector.load %arg3[%c0_39, %c0_40] : memref<256x256xf32, #tpu.memory_space<vmem>>, vector<256x256xf32>
    %cst_41 = arith.constant dense<0.000000e+00> : vector<128x256xf32>
    %43 = tpu.matmul %41, %42, %cst_41 {dimension_numbers = #tpu.dot_dimension_numbers<[1], [0], [0], [1], [0, 0, 1, 1], [], []>} : vector<128x256xf32>, vector<256x256xf32>, vector<128x256xf32> -> vector<128x256xf32>
    %c0_42 = arith.constant 0 : index
    %c0_43 = arith.constant 0 : index
    %44 = vector.load %arg4[%c0_42, %c0_43] : memref<1x256xf32, #tpu.memory_space<vmem>>, vector<1x256xf32>
    %45 = vector.broadcast %44 : vector<1x256xf32> to vector<128x256xf32>
    %46 = arith.addf %43, %45 : vector<128x256xf32>
    %cst_44 = arith.constant 0.000000e+00 : f32
    %47 = vector.broadcast %cst_44 : f32 to vector<128x256xf32>
    %48 = arith.maximumf %46, %47 : vector<128x256xf32>
    %49 = vector.extract_strided_slice %48 {offsets = [0, 0], sizes = [32, 256], strides = [1, 1]} : vector<128x256xf32> to vector<32x256xf32>
    %50 = vector.extract_strided_slice %48 {offsets = [32, 0], sizes = [32, 256], strides = [1, 1]} : vector<128x256xf32> to vector<32x256xf32>
    %51 = vector.extract_strided_slice %48 {offsets = [64, 0], sizes = [32, 256], strides = [1, 1]} : vector<128x256xf32> to vector<32x256xf32>
    %52 = vector.extract_strided_slice %48 {offsets = [96, 0], sizes = [32, 256], strides = [1, 1]} : vector<128x256xf32> to vector<32x256xf32>
    %53 = vector.extract_strided_slice %41 {offsets = [0, 0], sizes = [32, 256], strides = [1, 1]} : vector<128x256xf32> to vector<32x256xf32>
    %54 = vector.extract_strided_slice %41 {offsets = [32, 0], sizes = [32, 256], strides = [1, 1]} : vector<128x256xf32> to vector<32x256xf32>
    %55 = vector.extract_strided_slice %41 {offsets = [64, 0], sizes = [32, 256], strides = [1, 1]} : vector<128x256xf32> to vector<32x256xf32>
    %56 = vector.extract_strided_slice %41 {offsets = [96, 0], sizes = [32, 256], strides = [1, 1]} : vector<128x256xf32> to vector<32x256xf32>
    %57 = arith.maximumf %49, %50 : vector<32x256xf32>
    %58 = arith.maximumf %57, %51 : vector<32x256xf32>
    %59 = arith.maximumf %58, %52 : vector<32x256xf32>
    %cst_45 = arith.constant 0.000000e+00 : f32
    %60 = vector.broadcast %cst_45 : f32 to vector<32x256xf32>
    %cst_46 = arith.constant 0.000000e+00 : f32
    %61 = vector.broadcast %cst_46 : f32 to vector<32x256xf32>
    %62 = arith.subf %49, %59 : vector<32x256xf32>
    %63 = math.exp %62 : vector<32x256xf32>
    %64 = arith.addf %60, %63 : vector<32x256xf32>
    %65 = arith.mulf %63, %53 : vector<32x256xf32>
    %66 = arith.addf %61, %65 : vector<32x256xf32>
    %67 = arith.subf %50, %59 : vector<32x256xf32>
    %68 = math.exp %67 : vector<32x256xf32>
    %69 = arith.addf %64, %68 : vector<32x256xf32>
    %70 = arith.mulf %68, %54 : vector<32x256xf32>
    %71 = arith.addf %66, %70 : vector<32x256xf32>
    %72 = arith.subf %51, %59 : vector<32x256xf32>
    %73 = math.exp %72 : vector<32x256xf32>
    %74 = arith.addf %69, %73 : vector<32x256xf32>
    %75 = arith.mulf %73, %55 : vector<32x256xf32>
    %76 = arith.addf %71, %75 : vector<32x256xf32>
    %77 = arith.subf %52, %59 : vector<32x256xf32>
    %78 = math.exp %77 : vector<32x256xf32>
    %79 = arith.addf %74, %78 : vector<32x256xf32>
    %80 = arith.mulf %78, %56 : vector<32x256xf32>
    %81 = arith.addf %76, %80 : vector<32x256xf32>
    %82 = arith.divf %81, %79 : vector<32x256xf32>
    %cst_47 = arith.constant dense<0.000000e+00> : vector<32xf32>
    %83 = vector.multi_reduction <add>, %82, %cst_47 [1] : vector<32x256xf32> to vector<32xf32>
    %84 = vector.shape_cast %83 : vector<32xf32> to vector<32x1xf32>
    %85 = arith.addf %0, %84 : vector<32x1xf32>
    %c0_48 = arith.constant 0 : index
    %c0_49 = arith.constant 0 : index
    %86 = vector.load %arg1[%c0_48, %c0_49] : memref<32x4xf32, #tpu.memory_space<vmem>>, vector<32x4xf32>
    %c4 = arith.constant 4 : index
    %c0_50 = arith.constant 0 : index
    %c0_51 = arith.constant 0 : index
    %87 = vector.load %arg0[%c4, %c0_50, %c0_51] : memref<8x4x256xf32, #tpu.memory_space<vmem>>, vector<1x4x256xf32>
    %88 = vector.shape_cast %87 : vector<1x4x256xf32> to vector<4x256xf32>
    %cst_52 = arith.constant dense<0.000000e+00> : vector<32x256xf32>
    %89 = tpu.matmul %86, %88, %cst_52 {dimension_numbers = #tpu.dot_dimension_numbers<[1], [0], [0], [1], [0, 0, 1, 1], [], []>} : vector<32x4xf32>, vector<4x256xf32>, vector<32x256xf32> -> vector<32x256xf32>
    %c0_53 = arith.constant 0 : index
    %c0_54 = arith.constant 0 : index
    %90 = vector.load %arg2[%c0_53, %c0_54] : memref<32x1xf32, #tpu.memory_space<vmem>>, vector<32x1xf32>
    %91 = vector.broadcast %90 : vector<32x1xf32> to vector<32x256xf32>
    %92 = arith.addf %89, %91 : vector<32x256xf32>
    %cst_55 = arith.constant 0.000000e+00 : f32
    %93 = vector.broadcast %cst_55 : f32 to vector<32x256xf32>
    %94 = arith.maximumf %92, %93 : vector<32x256xf32>
    %c0_56 = arith.constant 0 : index
    %c0_57 = arith.constant 0 : index
    %95 = vector.load %arg8[%c0_56, %c0_57] : memref<128x256xf32, #tpu.memory_space<vmem>>, vector<32x256xf32>
    tpu.vector_store %arg8[%c0_56, %c0_57], %94 {strides = array<i32>} : memref<128x256xf32, #tpu.memory_space<vmem>>, vector<32x256xf32>,
    %c0_58 = arith.constant 0 : index
    %c0_59 = arith.constant 0 : index
    %96 = vector.load %arg1[%c0_58, %c0_59] : memref<32x4xf32, #tpu.memory_space<vmem>>, vector<32x4xf32>
    %c5 = arith.constant 5 : index
    %c0_60 = arith.constant 0 : index
    %c0_61 = arith.constant 0 : index
    %97 = vector.load %arg0[%c5, %c0_60, %c0_61] : memref<8x4x256xf32, #tpu.memory_space<vmem>>, vector<1x4x256xf32>
    %98 = vector.shape_cast %97 : vector<1x4x256xf32> to vector<4x256xf32>
    %cst_62 = arith.constant dense<0.000000e+00> : vector<32x256xf32>
    %99 = tpu.matmul %96, %98, %cst_62 {dimension_numbers = #tpu.dot_dimension_numbers<[1], [0], [0], [1], [0, 0, 1, 1], [], []>} : vector<32x4xf32>, vector<4x256xf32>, vector<32x256xf32> -> vector<32x256xf32>
    %c0_63 = arith.constant 0 : index
    %c0_64 = arith.constant 0 : index
    %100 = vector.load %arg2[%c0_63, %c0_64] : memref<32x1xf32, #tpu.memory_space<vmem>>, vector<32x1xf32>
    %101 = vector.broadcast %100 : vector<32x1xf32> to vector<32x256xf32>
    %102 = arith.addf %99, %101 : vector<32x256xf32>
    %cst_65 = arith.constant 0.000000e+00 : f32
    %103 = vector.broadcast %cst_65 : f32 to vector<32x256xf32>
    %104 = arith.maximumf %102, %103 : vector<32x256xf32>
    %c32_66 = arith.constant 32 : index
    %c0_67 = arith.constant 0 : index
    %105 = vector.load %arg8[%c32_66, %c0_67] : memref<128x256xf32, #tpu.memory_space<vmem>>, vector<32x256xf32>
    tpu.vector_store %arg8[%c32_66, %c0_67], %104 {strides = array<i32>} : memref<128x256xf32, #tpu.memory_space<vmem>>, vector<32x256xf32>,
    %c0_68 = arith.constant 0 : index
    %c0_69 = arith.constant 0 : index
    %106 = vector.load %arg1[%c0_68, %c0_69] : memref<32x4xf32, #tpu.memory_space<vmem>>, vector<32x4xf32>
    %c6 = arith.constant 6 : index
    %c0_70 = arith.constant 0 : index
    %c0_71 = arith.constant 0 : index
    %107 = vector.load %arg0[%c6, %c0_70, %c0_71] : memref<8x4x256xf32, #tpu.memory_space<vmem>>, vector<1x4x256xf32>
    %108 = vector.shape_cast %107 : vector<1x4x256xf32> to vector<4x256xf32>
    %cst_72 = arith.constant dense<0.000000e+00> : vector<32x256xf32>
    %109 = tpu.matmul %106, %108, %cst_72 {dimension_numbers = #tpu.dot_dimension_numbers<[1], [0], [0], [1], [0, 0, 1, 1], [], []>} : vector<32x4xf32>, vector<4x256xf32>, vector<32x256xf32> -> vector<32x256xf32>
    %c0_73 = arith.constant 0 : index
    %c0_74 = arith.constant 0 : index
    %110 = vector.load %arg2[%c0_73, %c0_74] : memref<32x1xf32, #tpu.memory_space<vmem>>, vector<32x1xf32>
    %111 = vector.broadcast %110 : vector<32x1xf32> to vector<32x256xf32>
    %112 = arith.addf %109, %111 : vector<32x256xf32>
    %cst_75 = arith.constant 0.000000e+00 : f32
    %113 = vector.broadcast %cst_75 : f32 to vector<32x256xf32>
    %114 = arith.maximumf %112, %113 : vector<32x256xf32>
    %c64_76 = arith.constant 64 : index
    %c0_77 = arith.constant 0 : index
    %115 = vector.load %arg8[%c64_76, %c0_77] : memref<128x256xf32, #tpu.memory_space<vmem>>, vector<32x256xf32>
    tpu.vector_store %arg8[%c64_76, %c0_77], %114 {strides = array<i32>} : memref<128x256xf32, #tpu.memory_space<vmem>>, vector<32x256xf32>,
    %c0_78 = arith.constant 0 : index
    %c0_79 = arith.constant 0 : index
    %116 = vector.load %arg1[%c0_78, %c0_79] : memref<32x4xf32, #tpu.memory_space<vmem>>, vector<32x4xf32>
    %c7 = arith.constant 7 : index
    %c0_80 = arith.constant 0 : index
    %c0_81 = arith.constant 0 : index
    %117 = vector.load %arg0[%c7, %c0_80, %c0_81] : memref<8x4x256xf32, #tpu.memory_space<vmem>>, vector<1x4x256xf32>
    %118 = vector.shape_cast %117 : vector<1x4x256xf32> to vector<4x256xf32>
    %cst_82 = arith.constant dense<0.000000e+00> : vector<32x256xf32>
    %119 = tpu.matmul %116, %118, %cst_82 {dimension_numbers = #tpu.dot_dimension_numbers<[1], [0], [0], [1], [0, 0, 1, 1], [], []>} : vector<32x4xf32>, vector<4x256xf32>, vector<32x256xf32> -> vector<32x256xf32>
    %c0_83 = arith.constant 0 : index
    %c0_84 = arith.constant 0 : index
    %120 = vector.load %arg2[%c0_83, %c0_84] : memref<32x1xf32, #tpu.memory_space<vmem>>, vector<32x1xf32>
    %121 = vector.broadcast %120 : vector<32x1xf32> to vector<32x256xf32>
    %122 = arith.addf %119, %121 : vector<32x256xf32>
    %cst_85 = arith.constant 0.000000e+00 : f32
    %123 = vector.broadcast %cst_85 : f32 to vector<32x256xf32>
    %124 = arith.maximumf %122, %123 : vector<32x256xf32>
    %c96_86 = arith.constant 96 : index
    %c0_87 = arith.constant 0 : index
    %125 = vector.load %arg8[%c96_86, %c0_87] : memref<128x256xf32, #tpu.memory_space<vmem>>, vector<32x256xf32>
    tpu.vector_store %arg8[%c96_86, %c0_87], %124 {strides = array<i32>} : memref<128x256xf32, #tpu.memory_space<vmem>>, vector<32x256xf32>,
    %c0_88 = arith.constant 0 : index
    %c0_89 = arith.constant 0 : index
    %126 = vector.load %arg8[%c0_88, %c0_89] : memref<128x256xf32, #tpu.memory_space<vmem>>, vector<128x256xf32>
    %c0_90 = arith.constant 0 : index
    %c0_91 = arith.constant 0 : index
    %127 = vector.load %arg3[%c0_90, %c0_91] : memref<256x256xf32, #tpu.memory_space<vmem>>, vector<256x256xf32>
    %cst_92 = arith.constant dense<0.000000e+00> : vector<128x256xf32>
    %128 = tpu.matmul %126, %127, %cst_92 {dimension_numbers = #tpu.dot_dimension_numbers<[1], [0], [0], [1], [0, 0, 1, 1], [], []>} : vector<128x256xf32>, vector<256x256xf32>, vector<128x256xf32> -> vector<128x256xf32>
    %c0_93 = arith.constant 0 : index
    %c0_94 = arith.constant 0 : index
    %129 = vector.load %arg4[%c0_93, %c0_94] : memref<1x256xf32, #tpu.memory_space<vmem>>, vector<1x256xf32>
    %130 = vector.broadcast %129 : vector<1x256xf32> to vector<128x256xf32>
    %131 = arith.addf %128, %130 : vector<128x256xf32>
    %cst_95 = arith.constant 0.000000e+00 : f32
    %132 = vector.broadcast %cst_95 : f32 to vector<128x256xf32>
    %133 = arith.maximumf %131, %132 : vector<128x256xf32>
    %134 = vector.extract_strided_slice %133 {offsets = [0, 0], sizes = [32, 256], strides = [1, 1]} : vector<128x256xf32> to vector<32x256xf32>
    %135 = vector.extract_strided_slice %133 {offsets = [32, 0], sizes = [32, 256], strides = [1, 1]} : vector<128x256xf32> to vector<32x256xf32>
    %136 = vector.extract_strided_slice %133 {offsets = [64, 0], sizes = [32, 256], strides = [1, 1]} : vector<128x256xf32> to vector<32x256xf32>
    %137 = vector.extract_strided_slice %133 {offsets = [96, 0], sizes = [32, 256], strides = [1, 1]} : vector<128x256xf32> to vector<32x256xf32>
    %138 = vector.extract_strided_slice %126 {offsets = [0, 0], sizes = [32, 256], strides = [1, 1]} : vector<128x256xf32> to vector<32x256xf32>
    %139 = vector.extract_strided_slice %126 {offsets = [32, 0], sizes = [32, 256], strides = [1, 1]} : vector<128x256xf32> to vector<32x256xf32>
    %140 = vector.extract_strided_slice %126 {offsets = [64, 0], sizes = [32, 256], strides = [1, 1]} : vector<128x256xf32> to vector<32x256xf32>
    %141 = vector.extract_strided_slice %126 {offsets = [96, 0], sizes = [32, 256], strides = [1, 1]} : vector<128x256xf32> to vector<32x256xf32>
    %142 = arith.maximumf %134, %135 : vector<32x256xf32>
    %143 = arith.maximumf %142, %136 : vector<32x256xf32>
    %144 = arith.maximumf %143, %137 : vector<32x256xf32>
    %cst_96 = arith.constant 0.000000e+00 : f32
    %145 = vector.broadcast %cst_96 : f32 to vector<32x256xf32>
    %cst_97 = arith.constant 0.000000e+00 : f32
    %146 = vector.broadcast %cst_97 : f32 to vector<32x256xf32>
    %147 = arith.subf %134, %144 : vector<32x256xf32>
    %148 = math.exp %147 : vector<32x256xf32>
    %149 = arith.addf %145, %148 : vector<32x256xf32>
    %150 = arith.mulf %148, %138 : vector<32x256xf32>
    %151 = arith.addf %146, %150 : vector<32x256xf32>
    %152 = arith.subf %135, %144 : vector<32x256xf32>
    %153 = math.exp %152 : vector<32x256xf32>
    %154 = arith.addf %149, %153 : vector<32x256xf32>
    %155 = arith.mulf %153, %139 : vector<32x256xf32>
    %156 = arith.addf %151, %155 : vector<32x256xf32>
    %157 = arith.subf %136, %144 : vector<32x256xf32>
    %158 = math.exp %157 : vector<32x256xf32>
    %159 = arith.addf %154, %158 : vector<32x256xf32>
    %160 = arith.mulf %158, %140 : vector<32x256xf32>
    %161 = arith.addf %156, %160 : vector<32x256xf32>
    %162 = arith.subf %137, %144 : vector<32x256xf32>
    %163 = math.exp %162 : vector<32x256xf32>
    %164 = arith.addf %159, %163 : vector<32x256xf32>
    %165 = arith.mulf %163, %141 : vector<32x256xf32>
    %166 = arith.addf %161, %165 : vector<32x256xf32>
    %167 = arith.divf %166, %164 : vector<32x256xf32>
    %cst_98 = arith.constant dense<0.000000e+00> : vector<32xf32>
    %168 = vector.multi_reduction <add>, %167, %cst_98 [1] : vector<32x256xf32> to vector<32xf32>
    %169 = vector.shape_cast %168 : vector<32xf32> to vector<32x1xf32>
    %170 = arith.addf %85, %169 : vector<32x1xf32>
    %cst_99 = arith.constant 0.001953125 : f32
    %171 = vector.broadcast %cst_99 : f32 to vector<32x1xf32>
    %172 = arith.mulf %170, %171 : vector<32x1xf32>
    %c0_100 = arith.constant 0 : index
    %c0_101 = arith.constant 0 : index
    %173 = vector.load %arg5[%c0_100, %c0_101] : memref<10x32xf32, #tpu.memory_space<vmem>>, vector<10x32xf32>
    %cst_102 = arith.constant dense<0.000000e+00> : vector<10x1xf32>
    %174 = tpu.matmul %173, %172, %cst_102 {dimension_numbers = #tpu.dot_dimension_numbers<[1], [0], [0], [1], [0, 0, 1, 1], [], []>} : vector<10x32xf32>, vector<32x1xf32>, vector<10x1xf32> -> vector<10x1xf32>
    %c0_103 = arith.constant 0 : index
    %c0_104 = arith.constant 0 : index
    %175 = vector.load %arg6[%c0_103, %c0_104] : memref<10x1xf32, #tpu.memory_space<vmem>>, vector<10x1xf32>
    %176 = arith.addf %174, %175 : vector<10x1xf32>
    %c0_105 = arith.constant 0 : index
    %c0_106 = arith.constant 0 : index
    %177 = vector.load %arg7[%c0_105, %c0_106] : memref<10x1xf32, #tpu.memory_space<vmem>>, vector<10x1xf32>
    tpu.vector_store %arg7[%c0_105, %c0_106], %176 {strides = array<i32>} : memref<10x1xf32, #tpu.memory_space<vmem>>, vector<10x1xf32>,
    return
  }
}

</mosaic_0001>

<bundles_post_ra>
// kernel: tile.8
= control target key start
LH: loop header
LB: loop body
LE: loop exit
PB: predicated region body
PF: predicated region fallthrough
CT: control target
= control target key end

     0   :  { %s22_s0 = inlined_call_operand.vmem [shape: f32[32], index: 0, kind: input, shape index: {}]   ;;  %s23_s1 = inlined_call_operand.vmem [shape: f32[8,32], index: 1, kind: output, shape index: {}]  }
   0x1   :  { %v4_v0 = vld [vmem:[%s22_s0] ss:$0 sm:$0xff] }
   0x2   :  { %5 = vst [vmem:[%s23_s1] sm:$0xff] %v4_v0 }

// kernel: tile.9
= control target key start
LH: loop header
LB: loop body
LE: loop exit
PB: predicated region body
PF: predicated region fallthrough
CT: control target
= control target key end

     0   :  { %s7_s6 = smov 3  ;;  %s14_s9 = smov 3  ;;  %vm4_vm0 = vcmask 261120   ;;  %vm11_vm1 = vcmask 1048320   ;;  %vm18_vm2 = vcmask 785920   ;;  %vm25_vm3 = vcmask 523520   ;;  %s76_s0 = inlined_call_operand.vmem [shape: f32[8,32], index: 0, kind: input, shape index: {}]   ;;  %s77_s1 = inlined_call_operand.vmem [shape: f32[1,256], index: 1, kind: output, shape index: {}]  }
   0x1   :  { %v38_v0 = vld [vmem:[%s76_s0 + $0x3] ss:$4 sm:%s7_s6]   ;;  %s45_s10 = smov 96   ;;  %s21_s11 = smov 3  ;;  %v39_v1 = vld [vmem:[%s76_s0 + $0x2] ss:$4 sm:%s14_s9]  }
   0x2   :  { %9 = vrot.lane.b32.xlu0 %v38_v0, %s45_s10  ;;  %v40_v2 = vld [vmem:[%s76_s0 + $0x1] ss:$4 sm:%s21_s11]   ;;  %s2_s16 = smov 3  ;;  %s46_s17 = smov 32  }
   0x3   :  { %23 = vrot.lane.b32.xlu1 %v40_v2, %s46_s17  ;;  %v3_v3 = vld [vmem:[%s76_s0] ss:$4 sm:%s2_s16]   ;;  %s47_s0 = smov 64  }
   0x4   :  { %5 = vst.msk [vmem:[#allocation0] ss:$8 sm:$0x3] %vm4_vm0, %v3_v3  }
   0x6   :  { %16 = vrot.lane.b32.xlu0 %v39_v1, %s47_s0 }
  0x74   :  { %v10_v4 = vpop.permute.xlu0 %9  }
  0x75   :  { %12 = vst.msk [vmem:[#allocation0] ss:$8 sm:$0x3] %vm11_vm1, %v10_v4   ;;  %v24_v5 = vpop.permute.xlu1 %23  }
  0x78   :  { %v17_v6 = vpop.permute.xlu0 %16  }
  0x79   :  { %19 = vst.msk [vmem:[#allocation0] ss:$8 sm:$0x3] %vm18_vm2, %v17_v6  }
  0x7a   :  { %26 = vst.msk [vmem:[#allocation0] ss:$8 sm:$0x3] %vm25_vm3, %v24_v5  }
  0x81   :  { %v30_v7 = vld [vmem:[#allocation0] sm:$0x1]  ;;  %v34_v8 = vld [vmem:[#allocation0 + $0x8] sm:$0x1] }
  0x82   :  { %32 = vst [vmem:[%s77_s1] sm:$0x1] %v30_v7  ;;  %41 = vst [vmem:[%s77_s1 + $0x1] sm:$0x1] %v34_v8 }

// kernel: model_forward.1
= control target key start
LH: loop header
LB: loop body
LE: loop exit
PB: predicated region body
PF: predicated region fallthrough
CT: control target
= control target key end

     0   :  { %vm70_vm0 = vcmask 1043456   ;;  %v2861_v2 = vmov 0.0   ;;  %v2862_v5 = vmov 0   ;;  %vm57_vm1 = vcmask 31744   ;;  %s4736_s0 = inlined_call_operand.vmem [shape: f32[8,4,256], index: 0, kind: input, shape index: {}]   ;;  %s4737_s1 = inlined_call_operand.vmem [shape: f32[32,4], index: 1, kind: input, shape index: {}]   ;;  %s4738_s2 = inlined_call_operand.vmem [shape: f32[32,1], index: 2, kind: input, shape index: {}]   ;;  %s4739_s3 = inlined_call_operand.vmem [shape: f32[256,256], index: 3, kind: input, shape index: {}]   ;;  %s4740_s4 = inlined_call_operand.vmem [shape: f32[1,256], index: 4, kind: input, shape index: {}]   ;;  %s4741_s5 = inlined_call_operand.vmem [shape: f32[10,32], index: 5, kind: input, shape index: {}]   ;;  %s4742_s6 = inlined_call_operand.vmem [shape: f32[10,1], index: 6, kind: input, shape index: {}]   ;;  %s4743_s7 = inlined_call_operand.vmem [shape: f32[10,1], index: 7, kind: output, shape index: {}]  }
   0x1   :  { %v30_v0 = vld [vmem:[%s4736_s0] sm:$0xff]  ;;  %v2453_v1 = vld [vmem:[%s4736_s0 + $0x8] sm:$0xff]  ;;  %139 = vmatprep.mubr.f32.mxu0 %v2861_v2  ;;  %292 = vmatprep.mubr.f32.mxu1 %v2861_v2  ;;  %v2460_v7 = vld [vmem:[%s4736_s0 + $0x10] sm:$0xff]  ;;  %vm2357_vm2 = vcmask 261120   ;;  %vm2441_vm3 = vcmask 1024   ;;  %vm2439_vm4 = vcmask 7168  }
   0x2   :  { %v56_v3 = vcombine.high %v30_v0, %v30_v0  ;;  %v211_v4 = vcombine.high %v2453_v1, %v2453_v1  ;;  %2691 = vset.pattern.permute.xlu0 %v2862_v5  ;;  %2692 = vset.pattern.permute.xlu1 %v2862_v5  ;;  %v2914_v6 = vld [vmem:[%s4737_s1] sm:$0xff]  ;;  %v2467_v8 = vld [vmem:[%s4736_s0 + $0x18] sm:$0xff]  ;;  %v364_v9 = vcombine.high %v2460_v7, %v2460_v7  ;;  %v2938_v12 = vld [vmem:[%s4737_s1 + $0x8] sm:$0xff] }
   0x3   :  { %v517_v10 = vcombine.high %v2467_v8, %v2467_v8  ;;  %v2474_v11 = vld [vmem:[%s4736_s0 + $0x20] sm:$0xff]  ;;  %v2956_v15 = vld [vmem:[%s4738_s2 + $0x10] sm:$0xff]  ;;  %v672_v17 = vld [vmem:[%s4739_s3 + $0x8] sm:$0xff] }
   0x4   :  { %2447 = vmatprep.subr.msk.mxu0 %vm70_vm0, %v56_v3  ;;  %2454 = vmatprep.subr.msk.mxu1 %vm70_vm0, %v211_v4  ;;  %v1219_v13 = vcombine.high %v2474_v11, %v2474_v11  ;;  %v2947_v14 = vld [vmem:[%s4738_s2] sm:$0xff]  ;;  %v2963_v16 = vld [vmem:[%s4737_s1 + $0x10] sm:$0xff]  ;;  %v674_v18 = vld [vmem:[%s4739_s3 + $0x18] sm:$0xff] }
   0x5   :  { %2448 = vmatpush1.msk.msra.mxu0 %vm70_vm0, %v30_v0  ;;  %2455 = vmatpush1.msk.msra.mxu1 %vm70_vm0, %v2453_v1  ;;  %v2976_v19 = vld [vmem:[%s4738_s2 + $0x8] sm:$0xff]  ;;  %v2979_v20 = vpack.c.bf16 %v674_v18, %v672_v17  ;;  %v2988_v21 = vld [vmem:[%s4738_s2 + $0x18] sm:$0xff]  ;;  %v671_v25 = vld [vmem:[%s4739_s3] sm:$0xff] }
   0x6   :  { %2449 = vmatmul.mubr.msk.f32.vlgmr.msra.gmra.mrb[0].mxu0 %vm57_vm1, %v2914_v6  ;;  %2456 = vmatmul.mubr.msk.f32.vlgmr.msra.gmra.mrb[0].mxu1 %vm57_vm1, %v2914_v6  ;;  %v2995_v22 = vld [vmem:[%s4737_s1 + $0x18] sm:$0xff]  ;;  %v3007_v23 = vld [vmem:[%s4736_s0 + $0x28] sm:$0xff]  ;;  %v673_v26 = vld [vmem:[%s4739_s3 + $0x10] sm:$0xff] }
   0x7   :  { %145 = vmatprep.mubr.f32.mxu0 %v2861_v2  ;;  %298 = vmatprep.mubr.f32.mxu1 %v2861_v2  ;;  %v1372_v24 = vcombine.high %v3007_v23, %v3007_v23  ;;  %v676_v27 = vld [vmem:[%s4739_s3 + $0x28] sm:$0xff]  ;;  %v678_v28 = vld [vmem:[%s4739_s3 + $0x38] sm:$0xff]  ;;  %v3035_v29 = vpack.c.bf16 %v673_v26, %v671_v25  ;;  %v675_v31 = vld [vmem:[%s4739_s3 + $0x20] sm:$0xff] }
   0x8   :  { %2461 = vmatprep.subr.msk.mxu0 %vm70_vm0, %v364_v9  ;;  %2468 = vmatprep.subr.msk.mxu1 %vm70_vm0, %v517_v10  ;;  %v3039_v30 = vpack.c.bf16 %v678_v28, %v676_v27  ;;  %v677_v32 = vld [vmem:[%s4739_s3 + $0x30] sm:$0xff]  ;;  %v680_v33 = vld [vmem:[%s4739_s3 + $0x48] sm:$0xff]  ;;  %v682_v34 = vld [vmem:[%s4739_s3 + $0x58] sm:$0xff] }
   0x9   :  { %2462 = vmatpush1.msk.msra.mxu0 %vm70_vm0, %v2460_v7  ;;  %2469 = vmatpush1.msk.msra.mxu1 %vm70_vm0, %v2467_v8  ;;  %v3061_v35 = vpack.c.bf16 %v677_v32, %v675_v31  ;;  %v3065_v36 = vpack.c.bf16 %v682_v34, %v680_v33  ;;  %v679_v37 = vld [vmem:[%s4739_s3 + $0x40] sm:$0xff]  ;;  %v681_v38 = vld [vmem:[%s4739_s3 + $0x50] sm:$0xff]  ;;  %v684_v39 = vld [vmem:[%s4739_s3 + $0x68] sm:$0xff] }
   0xa   :  { %2450 = vmatmul.mubr.msk.f32.gmra.mrb[2].mxu0 %vm57_vm1, %v2938_v12  ;;  %2457 = vmatmul.mubr.msk.f32.gmra.mrb[2].mxu1 %vm57_vm1, %v2938_v12  ;;  %v686_v40 = vld [vmem:[%s4739_s3 + $0x78] sm:$0xff]  ;;  %v3087_v41 = vpack.c.bf16 %v681_v38, %v679_v37  ;;  %v3093_v42 = vld [vmem:[%s4736_s0 + $0x30] sm:$0xff]  ;;  %v683_v44 = vld [vmem:[%s4739_s3 + $0x60] sm:$0xff] }
   0xb   :  { %151 = vmatprep.mubr.f32.mxu0 %v2861_v2  ;;  %304 = vmatprep.mubr.f32.mxu1 %v2861_v2  ;;  %v3096_v43 = vpack.c.bf16 %v686_v40, %v684_v39  ;;  %v685_v45 = vld [vmem:[%s4739_s3 + $0x70] sm:$0xff]  ;;  %v688_v46 = vld [vmem:[%s4739_s3 + $0x88] sm:$0xff]  ;;  %v690_v47 = vld [vmem:[%s4739_s3 + $0x98] sm:$0xff]  ;;  %v1525_v48 = vcombine.high %v3093_v42, %v3093_v42 }
   0xc   :  { %37 = vperm.xlu0 %2691, %v2947_v14   ;;  %2475 = vmatprep.subr.msk.mxu1 %vm70_vm0, %v1219_v13  ;;  %v3121_v49 = vpack.c.bf16 %v685_v45, %v683_v44  ;;  %v3125_v50 = vpack.c.bf16 %v690_v47, %v688_v46  ;;  %v687_v51 = vld [vmem:[%s4739_s3 + $0x80] sm:$0xff]  ;;  %v689_v52 = vld [vmem:[%s4739_s3 + $0x90] sm:$0xff]  ;;  %v692_v53 = vld [vmem:[%s4739_s3 + $0xa8] sm:$0xff] }
   0xd   :  { %47 = vperm.xlu1 %2692, %v2956_v15   ;;  %2522 = vmatprep.subr.bf16.mxu0 %v2979_v20  ;;  %v694_v54 = vld [vmem:[%s4739_s3 + $0xb8] sm:$0xff]  ;;  %v3146_v55 = vpack.c.bf16 %v689_v52, %v687_v51  ;;  %v691_v57 = vld [vmem:[%s4739_s3 + $0xa0] sm:$0xff]  ;;  %v693_v58 = vld [vmem:[%s4739_s3 + $0xb0] sm:$0xff] }
   0xe   :  { %2451 = vmatmul.mubr.msk.f32.gmra.mrb[4].mxu0 %vm57_vm1, %v2963_v16  ;;  %2458 = vmatmul.mubr.msk.f32.gmra.mrb[4].mxu1 %vm57_vm1, %v2963_v16  ;;  %v3151_v56 = vpack.c.bf16 %v694_v54, %v692_v53  ;;  %v696_v59 = vld [vmem:[%s4739_s3 + $0xc8] sm:$0xff]  ;;  %v698_v60 = vld [vmem:[%s4739_s3 + $0xd8] sm:$0xff]  ;;  %v3169_v61 = vpack.c.bf16 %v693_v58, %v691_v57  ;;  %v695_v63 = vld [vmem:[%s4739_s3 + $0xc0] sm:$0xff] }
   0xf   :  { %157 = vmatprep.mubr.f32.mxu0 %v2861_v2  ;;  %310 = vmatprep.mubr.f32.mxu1 %v2861_v2  ;;  %v3174_v62 = vpack.c.bf16 %v698_v60, %v696_v59  ;;  %v697_v0 = vld [vmem:[%s4739_s3 + $0xd0] sm:$0xff]  ;;  %v700_v1 = vld [vmem:[%s4739_s3 + $0xe8] sm:$0xff]  ;;  %v702_v3 = vld [vmem:[%s4739_s3 + $0xf8] sm:$0xff] }
  0x10   :  { %42 = vperm.xlu0 %2691, %v2976_v19   ;;  %v3194_v4 = vld [vmem:[%s4736_s0 + $0x38] sm:$0xff]  ;;  %v3197_v5 = vpack.c.bf16 %v697_v0, %v695_v63  ;;  %v3202_v7 = vpack.c.bf16 %v702_v3, %v700_v1  ;;  %v699_v8 = vld [vmem:[%s4739_s3 + $0xe0] sm:$0xff]  ;;  %v701_v9 = vld [vmem:[%s4739_s3 + $0xf0] sm:$0xff] }
  0x11   :  { %52 = vperm.xlu1 %2692, %v2988_v21   ;;  %v704_v10 = vld [vmem:[%s4739_s3 + $0x108] sm:$0xff]  ;;  %v1678_v13 = vcombine.high %v3194_v4, %v3194_v4  ;;  %v3222_v17 = vpack.c.bf16 %v701_v9, %v699_v8  ;;  %v710_v26 = vld [vmem:[%s4739_s3 + $0x138] sm:$0xff]  ;;  %v707_v31 = vld [vmem:[%s4739_s3 + $0x120] sm:$0xff] }
  0x12   :  { %2452 = vmatmul.mubr.msk.f32.gmra.mrb[6].mxu0 %vm57_vm1, %v2995_v22  ;;  %2459 = vmatmul.mubr.msk.f32.gmra.mrb[6].mxu1 %vm57_vm1, %v2995_v22  ;;  %v708_v25 = vld [vmem:[%s4739_s3 + $0x128] sm:$0xff]  ;;  %v709_v32 = vld [vmem:[%s4739_s3 + $0x130] sm:$0xff]  ;;  %v714_v34 = vld [vmem:[%s4739_s3 + $0x158] sm:$0xff] }
  0x13   :  { %445 = vmatprep.mubr.f32.mxu0 %v2861_v2  ;;  %598 = vmatprep.mubr.f32.mxu1 %v2861_v2  ;;  %v3253_v28 = vpack.c.bf16 %v710_v26, %v708_v25  ;;  %v712_v33 = vld [vmem:[%s4739_s3 + $0x148] sm:$0xff]  ;;  %v3271_v37 = vpack.c.bf16 %v709_v32, %v707_v31  ;;  %v711_v39 = vld [vmem:[%s4739_s3 + $0x140] sm:$0xff]  ;;  %v713_v40 = vld [vmem:[%s4739_s3 + $0x150] sm:$0xff] }
  0x14   :  { %192 = vperm.xlu0 %2691, %v2947_v14   ;;  %v3276_v38 = vpack.c.bf16 %v714_v34, %v712_v33  ;;  %v718_v44 = vld [vmem:[%s4739_s3 + $0x178] sm:$0xff]  ;;  %v3294_v45 = vpack.c.bf16 %v713_v40, %v711_v39  ;;  %v715_v47 = vld [vmem:[%s4739_s3 + $0x160] sm:$0xff]  ;;  %v720_v51 = vld [vmem:[%s4739_s3 + $0x188] sm:$0xff] }
  0x15   :  { %197 = vperm.xlu1 %2692, %v2976_v19   ;;  %v722_v52 = vld [vmem:[%s4739_s3 + $0x198] sm:$0xff]  ;;  %v719_v57 = vld [vmem:[%s4739_s3 + $0x180] sm:$0xff]  ;;  %v729_v8 = vld [vmem:[%s4739_s3 + $0x1d0] sm:$0xff] }
  0x16   :  { %2463 = vmatmul.mubr.msk.f32.vlgmr.msra.gmra.mrb[8].mxu0 %vm57_vm1, %v2914_v6  ;;  %2470 = vmatmul.mubr.msk.f32.vlgmr.msra.gmra.mrb[8].mxu1 %vm57_vm1, %v2914_v6  ;;  %v3322_v54 = vpack.c.bf16 %v722_v52, %v720_v51  ;;  %v726_v58 = vld [vmem:[%s4739_s3 + $0x1b8] sm:$0xff]  ;;  %v723_v63 = vld [vmem:[%s4739_s3 + $0x1a0] sm:$0xff] }
  0x17   :  { %451 = vmatprep.mubr.f32.mxu0 %v2861_v2  ;;  %604 = vmatprep.mubr.f32.mxu1 %v2861_v2  ;;  %v730_v0 = vld [vmem:[%s4739_s3 + $0x1d8] sm:$0xff] }
  0x18   :  { %2476 = vmatpush1.msk.msra.mxu1 %vm70_vm0, %v2474_v11  ;;  %202 = vperm.xlu0 %2691, %v2956_v15   ;;  %v706_v11 = vld [vmem:[%s4739_s3 + $0x118] sm:$0xff] }
  0x19   :  { %207 = vperm.xlu1 %2692, %v2988_v21   ;;  %2482 = vmatprep.subr.msk.mxu1 %vm70_vm0, %v1372_v24  ;;  %v3227_v18 = vpack.c.bf16 %v706_v11, %v704_v10  ;;  %v705_v24 = vld [vmem:[%s4739_s3 + $0x110] sm:$0xff]  ;;  %v734_v10 = vld [vmem:[%s4739_s3 + $0x1f8] sm:$0xff] }
  0x1a   :  { %2464 = vmatmul.mubr.msk.f32.gmra.mrb[10].mxu0 %vm57_vm1, %v2938_v12  ;;  %2471 = vmatmul.mubr.msk.f32.gmra.mrb[10].mxu1 %vm57_vm1, %v2938_v12 }
  0x1b   :  { %457 = vmatprep.mubr.f32.mxu0 %v2861_v2  ;;  %610 = vmatprep.mubr.f32.mxu1 %v2861_v2 }
  0x1c   :  { %345 = vperm.xlu0 %2691, %v2947_v14   ;;  %2524 = vmatpush1.bf16.msra.mxu0 %v3035_v29 }
  0x1d   :  { %350 = vperm.xlu1 %2692, %v2976_v19   ;;  %2526 = vmatprep.subr.bf16.mxu0 %v3039_v30 }
  0x1e   :  { %2465 = vmatmul.mubr.msk.f32.gmra.mrb[12].mxu0 %vm57_vm1, %v2963_v16  ;;  %2472 = vmatmul.mubr.msk.f32.gmra.mrb[12].mxu1 %vm57_vm1, %v2963_v16 }
  0x1f   :  { %463 = vmatprep.mubr.f32.mxu0 %v2861_v2  ;;  %616 = vmatprep.mubr.f32.mxu1 %v2861_v2 }
  0x20   :  { %355 = vperm.xlu0 %2691, %v2956_v15   ;;  %2528 = vmatpush1.bf16.msra.mxu0 %v3061_v35 }
  0x21   :  { %360 = vperm.xlu1 %2692, %v2988_v21   ;;  %2530 = vmatprep.subr.bf16.mxu0 %v3065_v36 }
  0x22   :  { %2466 = vmatmul.mubr.msk.f32.gmra.mrb[14].mxu0 %vm57_vm1, %v2995_v22  ;;  %2473 = vmatmul.mubr.msk.f32.gmra.mrb[14].mxu1 %vm57_vm1, %v2995_v22 }
  0x23   :  { %1300 = vmatprep.mubr.f32.mxu1 %v2861_v2 }
  0x24   :  { %498 = vperm.xlu0 %2691, %v2947_v14   ;;  %2532 = vmatpush1.bf16.msra.mxu0 %v3087_v41 }
  0x25   :  { %503 = vperm.xlu1 %2692, %v2976_v19   ;;  %2534 = vmatprep.subr.bf16.mxu0 %v3096_v43 }
  0x26   :  { %2477 = vmatmul.mubr.msk.f32.vlgmr.msra.gmra.mrb[16].mxu1 %vm57_vm1, %v2914_v6 }
  0x27   :  { %1306 = vmatprep.mubr.f32.mxu1 %v2861_v2  ;;  %2483 = vmatpush1.msk.msra.mxu1 %vm70_vm0, %v3007_v23  ;;  %v703_v23 = vld [vmem:[%s4739_s3 + $0x100] sm:$0xff] }
  0x28   :  { %508 = vperm.xlu0 %2691, %v2956_v15   ;;  %2489 = vmatprep.subr.msk.mxu1 %vm70_vm0, %v1525_v48  ;;  %v3248_v27 = vpack.c.bf16 %v705_v24, %v703_v23  ;;  %v717_v48 = vld [vmem:[%s4739_s3 + $0x170] sm:$0xff] }
  0x29   :  { %513 = vperm.xlu1 %2692, %v2988_v21   ;;  %2536 = vmatpush1.bf16.msra.mxu0 %v3121_v49  ;;  %v3317_v53 = vpack.c.bf16 %v717_v48, %v715_v47  ;;  %v733_v23 = vld [vmem:[%s4739_s3 + $0x1f0] sm:$0xff] }
  0x2a   :  { %2478 = vmatmul.mubr.msk.f32.gmra.mrb[18].mxu1 %vm57_vm1, %v2938_v12  ;;  %2538 = vmatprep.subr.bf16.mxu0 %v3125_v50 }
  0x2b   :  { %1312 = vmatprep.mubr.f32.mxu1 %v2861_v2 }
  0x2c   :  { %1200 = vperm.xlu0 %2691, %v2947_v14  }
  0x2d   :  { %1205 = vperm.xlu1 %2692, %v2976_v19   ;;  %2540 = vmatpush1.bf16.msra.mxu0 %v3146_v55 }
  0x2e   :  { %2479 = vmatmul.mubr.msk.f32.gmra.mrb[20].mxu1 %vm57_vm1, %v2963_v16  ;;  %2542 = vmatprep.subr.bf16.mxu0 %v3151_v56 }
  0x2f   :  { %1318 = vmatprep.mubr.f32.mxu1 %v2861_v2 }
  0x30   :  { %1210 = vperm.xlu0 %2691, %v2956_v15  }
  0x31   :  { %1215 = vperm.xlu1 %2692, %v2988_v21   ;;  %2544 = vmatpush1.bf16.msra.mxu0 %v3169_v61 }
  0x32   :  { %2480 = vmatmul.mubr.msk.f32.gmra.mrb[22].mxu1 %vm57_vm1, %v2995_v22  ;;  %2546 = vmatprep.subr.bf16.mxu0 %v3174_v62 }
  0x33   :  { %1453 = vmatprep.mubr.f32.mxu1 %v2861_v2 }
  0x34   :  { %1511 = vperm.xlu0 %2691, %v2976_v19  }
  0x35   :  { %1353 = vperm.xlu1 %2692, %v2947_v14   ;;  %2548 = vmatpush1.bf16.msra.mxu0 %v3197_v5 }
  0x36   :  { %2484 = vmatmul.mubr.msk.f32.vlgmr.msra.gmra.mrb[24].mxu1 %vm57_vm1, %v2914_v6  ;;  %2550 = vmatprep.subr.bf16.mxu0 %v3202_v7 }
  0x37   :  { %1459 = vmatprep.mubr.f32.mxu1 %v2861_v2  ;;  %2490 = vmatpush1.msk.msra.mxu1 %vm70_vm0, %v3093_v42  ;;  %v716_v42 = vld [vmem:[%s4739_s3 + $0x168] sm:$0xff] }
  0x38   :  { %1516 = vperm.xlu0 %2691, %v2956_v15   ;;  %2496 = vmatprep.subr.msk.mxu1 %vm70_vm0, %v1678_v13  ;;  %v3299_v46 = vpack.c.bf16 %v718_v44, %v716_v42  ;;  %v731_v13 = vld [vmem:[%s4739_s3 + $0x1e0] sm:$0xff] }
  0x39   :  { %1358 = vperm.xlu1 %2692, %v2976_v19   ;;  %2552 = vmatpush1.bf16.msra.mxu0 %v3222_v17  ;;  %v3408_v24 = vpack.c.bf16 %v733_v23, %v731_v13 }
  0x3a   :  { %2485 = vmatmul.mubr.msk.f32.gmra.mrb[26].mxu1 %vm57_vm1, %v2938_v12  ;;  %2554 = vmatprep.subr.bf16.mxu0 %v3227_v18 }
  0x3b   :  { %1465 = vmatprep.mubr.f32.mxu1 %v2861_v2 }
  0x3c   :  { %1521 = vperm.xlu0 %2691, %v2988_v21  }
  0x3d   :  { %1363 = vperm.xlu1 %2692, %v2956_v15   ;;  %2556 = vmatpush1.bf16.msra.mxu0 %v3248_v27 }
  0x3e   :  { %2486 = vmatmul.mubr.msk.f32.gmra.mrb[28].mxu1 %vm57_vm1, %v2963_v16  ;;  %2558 = vmatprep.subr.bf16.mxu0 %v3253_v28 }
  0x3f   :  { %1471 = vmatprep.mubr.f32.mxu1 %v2861_v2 }
  0x40   :  { %1659 = vperm.xlu0 %2691, %v2947_v14  }
  0x41   :  { %1368 = vperm.xlu1 %2692, %v2988_v21   ;;  %2560 = vmatpush1.bf16.msra.mxu0 %v3271_v37 }
  0x42   :  { %2487 = vmatmul.mubr.msk.f32.gmra.mrb[30].mxu1 %vm57_vm1, %v2995_v22  ;;  %2562 = vmatprep.subr.bf16.mxu0 %v3276_v38 }
  0x43   :  { %1606 = vmatprep.mubr.f32.mxu1 %v2861_v2 }
  0x44   :  { %1664 = vperm.xlu0 %2691, %v2976_v19   ;;  %v721_v19 = vld [vmem:[%s4739_s3 + $0x190] sm:$0xff] }
  0x45   :  { %1506 = vperm.xlu1 %2692, %v2947_v14   ;;  %2564 = vmatpush1.bf16.msra.mxu0 %v3294_v45  ;;  %v724_v14 = vld [vmem:[%s4739_s3 + $0x1a8] sm:$0xff]  ;;  %v3343_v59 = vpack.c.bf16 %v721_v19, %v719_v57 }
  0x46   :  { %2491 = vmatmul.mubr.msk.f32.vlgmr.msra.gmra.mrb[32].mxu1 %vm57_vm1, %v2914_v6  ;;  %2566 = vmatprep.subr.bf16.mxu0 %v3299_v46  ;;  %v3348_v60 = vpack.c.bf16 %v726_v58, %v724_v14 }
  0x47   :  { %1612 = vmatprep.mubr.f32.mxu1 %v2861_v2  ;;  %2497 = vmatpush1.msk.msra.mxu1 %vm70_vm0, %v3194_v4  ;;  %v727_v4 = vld [vmem:[%s4739_s3 + $0x1c0] sm:$0xff] }
  0x48   :  { %1669 = vperm.xlu0 %2691, %v2956_v15   ;;  %2657 = vmatprep.subr.bf16.mxu1 %v2979_v20  ;;  %v725_v15 = vld [vmem:[%s4739_s3 + $0x1b0] sm:$0xff]  ;;  %v3386_v9 = vpack.c.bf16 %v729_v8, %v727_v4 }
  0x49   :  { %1674 = vperm.xlu1 %2692, %v2988_v21   ;;  %2568 = vmatpush1.bf16.msra.mxu0 %v3317_v53  ;;  %v728_v21 = vld [vmem:[%s4739_s3 + $0x1c8] sm:$0xff]  ;;  %v3364_v1 = vpack.c.bf16 %v725_v15, %v723_v63 }
  0x4a   :  { %2492 = vmatmul.mubr.msk.f32.gmra.mrb[34].mxu1 %vm57_vm1, %v2938_v12  ;;  %2570 = vmatprep.subr.bf16.mxu0 %v3322_v54  ;;  %v3369_v3 = vpack.c.bf16 %v730_v0, %v728_v21 }
  0x4b   :  { %1618 = vmatprep.mubr.f32.mxu1 %v2861_v2 }
  0x4d   :  { %2572 = vmatpush1.bf16.msra.mxu0 %v3343_v59 }
  0x4e   :  { %2493 = vmatmul.mubr.msk.f32.gmra.mrb[36].mxu1 %vm57_vm1, %v2963_v16  ;;  %2574 = vmatprep.subr.bf16.mxu0 %v3348_v60 }
  0x4f   :  { %1624 = vmatprep.mubr.f32.mxu1 %v2861_v2 }
  0x51   :  { %2576 = vmatpush1.bf16.msra.mxu0 %v3364_v1 }
  0x52   :  { %2494 = vmatmul.mubr.msk.f32.gmra.mrb[38].mxu1 %vm57_vm1, %v2995_v22  ;;  %2578 = vmatprep.subr.bf16.mxu0 %v3369_v3 }
  0x53   :  { %1759 = vmatprep.mubr.f32.mxu1 %v2861_v2 }
  0x55   :  { %2580 = vmatpush1.bf16.msra.mxu0 %v3386_v9 }
  0x56   :  { %2498 = vmatmul.mubr.msk.f32.vlgmr.msra.gmra.mrb[40].mxu1 %vm57_vm1, %v2914_v6  ;;  %v732_v6 = vld [vmem:[%s4739_s3 + $0x1e8] sm:$0xff] }
  0x57   :  { %1765 = vmatprep.mubr.f32.mxu1 %v2861_v2  ;;  %2673 = vmatpush1.bf16.msra.mxu1 %v3035_v29  ;;  %v3399_v11 = vpack.c.bf16 %v734_v10, %v732_v6 }
  0x58   :  { %2658 = vmatprep.subr.bf16.mxu1 %v3039_v30 }
  0x59   :  { %2582 = vmatprep.subr.bf16.mxu0 %v3399_v11 }
  0x5a   :  { %2499 = vmatmul.mubr.msk.f32.gmra.mrb[42].mxu1 %vm57_vm1, %v2938_v12  ;;  %2584 = vmatpush1.bf16.msra.mxu0 %v3408_v24 }
  0x5b   :  { %1771 = vmatprep.mubr.f32.mxu1 %v2861_v2  ;;  %2674 = vmatpush1.bf16.msra.mxu1 %v3061_v35 }
  0x5c   :  { %2659 = vmatprep.subr.bf16.mxu1 %v3065_v36  ;;  %2586 = vmatprep.subr.bf16.mxu0 %v2979_v20 }
  0x5e   :  { %2500 = vmatmul.mubr.msk.f32.gmra.mrb[44].mxu1 %vm57_vm1, %v2963_v16 }
  0x5f   :  { %1777 = vmatprep.mubr.f32.mxu1 %v2861_v2  ;;  %2675 = vmatpush1.bf16.msra.mxu1 %v3087_v41 }
  0x60   :  { %2660 = vmatprep.subr.bf16.mxu1 %v3096_v43 }
  0x62   :  { %2501 = vmatmul.mubr.msk.f32.gmra.mrb[46].mxu1 %vm57_vm1, %v2995_v22 }
  0x63   :  { %2676 = vmatpush1.bf16.msra.mxu1 %v3121_v49 }
  0x64   :  { %2661 = vmatprep.subr.bf16.mxu1 %v3125_v50 }
  0x67   :  { %2677 = vmatpush1.bf16.msra.mxu1 %v3146_v55 }
  0x68   :  { %2662 = vmatprep.subr.bf16.mxu1 %v3151_v56 }
  0x6b   :  { %2678 = vmatpush1.bf16.msra.mxu1 %v3169_v61 }
  0x6c   :  { %2663 = vmatprep.subr.bf16.mxu1 %v3174_v62 }
  0x6f   :  { %2679 = vmatpush1.bf16.msra.mxu1 %v3197_v5 }
  0x70   :  { %2664 = vmatprep.subr.bf16.mxu1 %v3202_v7 }
  0x73   :  { %2680 = vmatpush1.bf16.msra.mxu1 %v3222_v17 }
  0x74   :  { %2665 = vmatprep.subr.bf16.mxu1 %v3227_v18 }
  0x77   :  { %2681 = vmatpush1.bf16.msra.mxu1 %v3248_v27 }
  0x78   :  { %2666 = vmatprep.subr.bf16.mxu1 %v3253_v28 }
  0x7b   :  { %2682 = vmatpush1.bf16.msra.mxu1 %v3271_v37 }
  0x7c   :  { %2667 = vmatprep.subr.bf16.mxu1 %v3276_v38 }
  0x7f   :  { %2683 = vmatpush1.bf16.msra.mxu1 %v3294_v45 }
  0x80   :  { %2668 = vmatprep.subr.bf16.mxu1 %v3299_v46 }
  0x83   :  { %2684 = vmatpush1.bf16.msra.mxu1 %v3317_v53 }
  0x84   :  { %2669 = vmatprep.subr.bf16.mxu1 %v3322_v54 }
  0x87   :  { %2685 = vmatpush1.bf16.msra.mxu1 %v3343_v59 }
  0x88   :  { %2670 = vmatprep.subr.bf16.mxu1 %v3348_v60 }
  0x8b   :  { %2686 = vmatpush1.bf16.msra.mxu1 %v3364_v1  ;;  %v38_v2 = vpop.permute.xlu0 %37 }
  0x8c   :  { %2671 = vmatprep.subr.bf16.mxu1 %v3369_v3  ;;  %v48_v16 = vpop.permute.xlu1 %47 }
  0x8f   :  { %2687 = vmatpush1.bf16.msra.mxu1 %v3386_v9  ;;  %v43_v12 = vpop.permute.xlu0 %42 }
  0x90   :  { %2672 = vmatprep.subr.bf16.mxu1 %v3399_v11  ;;  %v53_v34 = vpop.permute.xlu1 %52 }
  0x93   :  { %2688 = vmatpush1.bf16.msra.mxu1 %v3408_v24  ;;  %v193_v33 = vpop.permute.xlu0 %192 }
  0x94   :  { %v198_v8 = vpop.permute.xlu1 %197 }
  0x97   :  { %v203_v4 = vpop.permute.xlu0 %202 }
  0xd9   :  { %v141_v20 = vpop.f32.mrb[0].mxu0  ;;  %v294_v22 = vpop.f32.mrb[0].mxu1 }
  0xda   :  { %v3447_v25 = vadd.f32 %v141_v20, %v38_v2  ;;  %v143_v26 = vpop.f32.mrb[1].mxu0  ;;  %v296_v31 = vpop.f32.mrb[1].mxu1 }
  0xdb   :  { %v3449_v32 = vadd.f32 %v143_v26, %v38_v2 }
  0xdc   :  { %v4758_v44 = vmax.f32 %v3447_v25, 0.0 }
  0xdd   :  { %v4754_v39 = vmax.f32 %v3449_v32, 0.0  ;;  %v147_v40 = vpop.f32.mrb[2].mxu0  ;;  %v300_v42 = vpop.f32.mrb[2].mxu1 }
  0xde   :  { %v3453_v47 = vadd.f32 %v147_v40, %v43_v12  ;;  %v149_v48 = vpop.f32.mrb[3].mxu0  ;;  %v302_v51 = vpop.f32.mrb[3].mxu1  ;;  %v3491_v40 = vadd.f32 %v294_v22, %v193_v33 }
  0xdf   :  { %v3455_v52 = vadd.f32 %v149_v48, %v43_v12  ;;  %811 = vmatprep.mubr.f32.mxu0 %v4754_v39  ;;  %v3479_v12 = vadd.f32 %v296_v31, %v193_v33  ;;  %v3510_v33 = vadd.f32 %v300_v42, %v198_v8 }
  0xe0   :  { %812 = vmatmul.mubr.f32.vlgmr.msra.gmra.mrb[16].mxu0 %v4758_v44  ;;  %v4749_v58 = vmax.f32 %v3453_v47, 0.0 }
  0xe1   :  { %4919 = vst [vmem:[#allocation3_spill] sm:$0xff] %v3455_v52  ;;  %v4748_v57 = vmax.f32 %v3455_v52, 0.0  ;;  %v153_v19 = vpop.f32.mrb[4].mxu0  ;;  %v306_v14 = vpop.f32.mrb[4].mxu1  ;;  %2588 = vmatpush1.bf16.msra.mxu0 %v3035_v29  ;;  %v4750_v48 = vmax.f32 %v3479_v12, 0.0  ;;  %4925 = vst [vmem:[#allocation9_spill] sm:$0xff] %v3510_v33 }
  0xe2   :  { %v3464_v63 = vadd.f32 %v153_v19, %v48_v16  ;;  %v155_v15 = vpop.f32.mrb[5].mxu0  ;;  %v308_v21 = vpop.f32.mrb[5].mxu1  ;;  %2590 = vmatprep.subr.bf16.mxu0 %v3039_v30  ;;  %v3498_v19 = vadd.f32 %v302_v51, %v198_v8  ;;  %v3526_v42 = vadd.f32 %v306_v14, %v203_v4 }
  0xe3   :  { %v3467_v0 = vadd.f32 %v155_v15, %v48_v16  ;;  %817 = vmatprep.mubr.f32.mxu0 %v4748_v57  ;;  %v346_v15 = vpop.permute.xlu0 %345 }
  0xe4   :  { %4920 = vst [vmem:[#allocation4_spill] sm:$0xff] %v3464_v63  ;;  %818 = vmatmul.mubr.f32.gmra.mrb[18].mxu0 %v4749_v58  ;;  %v4747_v13 = vmax.f32 %v3464_v63, 0.0  ;;  %4924 = vst [vmem:[#allocation8_spill] sm:$0xff] %v3498_v19  ;;  %v4756_v14 = vmax.f32 %v3526_v42, 0.0 }
  0xe5   :  { %4921 = vst [vmem:[#allocation5_spill] sm:$0xff] %v3467_v0  ;;  %v4746_v29 = vmax.f32 %v3467_v0, 0.0  ;;  %v159_v6 = vpop.f32.mrb[6].mxu0  ;;  %v312_v10 = vpop.f32.mrb[6].mxu1  ;;  %2592 = vmatpush1.bf16.msra.mxu0 %v3061_v35  ;;  %4927 = vst [vmem:[#allocation11_spill] sm:$0xff] %v3526_v42 }
  0xe6   :  { %v3476_v23 = vadd.f32 %v159_v6, %v53_v34  ;;  %v161_v30 = vpop.f32.mrb[7].mxu0  ;;  %v314_v2 = vpop.f32.mrb[7].mxu1  ;;  %2594 = vmatprep.subr.bf16.mxu0 %v3065_v36 }
  0xe7   :  { %v3481_v16 = vadd.f32 %v161_v30, %v53_v34  ;;  %823 = vmatprep.mubr.f32.mxu0 %v4746_v29  ;;  %v208_v6 = vpop.permute.xlu1 %207 }
  0xe8   :  { %4922 = vst [vmem:[#allocation6_spill] sm:$0xff] %v3476_v23  ;;  %824 = vmatmul.mubr.f32.gmra.mrb[20].mxu0 %v4747_v13  ;;  %v4745_v36 = vmax.f32 %v3476_v23, 0.0  ;;  %v3532_v58 = vadd.f32 %v314_v2, %v208_v6 }
  0xe9   :  { %4923 = vst [vmem:[#allocation7_spill] sm:$0xff] %v3481_v16  ;;  %v4744_v35 = vmax.f32 %v3481_v16, 0.0  ;;  %v447_v20 = vpop.f32.mrb[8].mxu0  ;;  %v3488_v26 = vpop.f32.mrb[8].mxu1  ;;  %2596 = vmatpush1.bf16.msra.mxu0 %v3087_v41 }
  0xea   :  { %v449_v31 = vpop.f32.mrb[9].mxu0  ;;  %v3494_v34 = vpop.f32.mrb[9].mxu1  ;;  %2598 = vmatprep.subr.bf16.mxu0 %v3096_v43  ;;  %v4752_v43 = vmax.f32 %v3491_v40, 0.0  ;;  %4928 = vst [vmem:[#allocation12_spill] sm:$0xff] %v3532_v58  ;;  %v4757_v2 = vmax.f32 %v3532_v58, 0.0 }
  0xeb   :  { %829 = vmatprep.mubr.f32.mxu0 %v4744_v35  ;;  %v4751_v35 = vmax.f32 %v3498_v19, 0.0 }
  0xec   :  { %830 = vmatmul.mubr.f32.gmra.mrb[22].mxu0 %v4745_v36  ;;  %v3516_v36 = vadd.f32 %v308_v21, %v203_v4  ;;  %v351_v21 = vpop.permute.xlu1 %350 }
  0xed   :  { %v453_v41 = vpop.f32.mrb[10].mxu0  ;;  %v3504_v22 = vpop.f32.mrb[10].mxu1  ;;  %835 = vmatprep.mubr.f32.mxu0 %v4750_v48  ;;  %2600 = vmatpush1.bf16.msra.mxu0 %v3121_v49  ;;  %v4753_v49 = vmax.f32 %v3510_v33, 0.0 }
  0xee   :  { %v455_v51 = vpop.f32.mrb[11].mxu0  ;;  %v3512_v30 = vpop.f32.mrb[11].mxu1  ;;  %2602 = vmatprep.subr.bf16.mxu0 %v3125_v50  ;;  %4926 = vst [vmem:[#allocation10_spill] sm:$0xff] %v3516_v36  ;;  %v4755_v57 = vmax.f32 %v3516_v36, 0.0 }
  0xef   :  { %v356_v48 = vpop.permute.xlu0 %355 }
  0xf0   :  { %836 = vmatmul.mubr.f32.gmra.mrb[24].mxu0 %v4752_v43  ;;  %v361_v39 = vpop.permute.xlu1 %360 }
  0xf1   :  { %v459_v29 = vpop.f32.mrb[12].mxu0  ;;  %v3520_v13 = vpop.f32.mrb[12].mxu1  ;;  %841 = vmatprep.mubr.f32.mxu0 %v4751_v35  ;;  %2604 = vmatpush1.bf16.msra.mxu0 %v3146_v55 }
  0xf2   :  { %v461_v50 = vpop.f32.mrb[13].mxu0  ;;  %v3528_v8 = vpop.f32.mrb[13].mxu1  ;;  %2606 = vmatprep.subr.bf16.mxu0 %v3151_v56  ;;  %v3542_v56 = vadd.f32 %v312_v10, %v208_v6  ;;  %v3558_v6 = vadd.f32 %v447_v20, %v346_v15 }
  0xf3   :  { %v3580_v44 = vadd.f32 %v461_v50, %v356_v48 }
  0xf4   :  { %842 = vmatmul.mubr.f32.gmra.mrb[26].mxu0 %v4753_v49  ;;  %4929 = vst [vmem:[#allocation13_spill] sm:$0xff] %v3542_v56  ;;  %v3548_v49 = vadd.f32 %v449_v31, %v346_v15  ;;  %v4759_v10 = vmax.f32 %v3542_v56, 0.0  ;;  %v499_v31 = vpop.permute.xlu0 %498  ;;  %v4762_v20 = vmax.f32 %v3558_v6, 0.0  ;;  %v3574_v15 = vadd.f32 %v453_v41, %v351_v21 }
  0xf5   :  { %v465_v35 = vpop.f32.mrb[14].mxu0  ;;  %v3536_v55 = vpop.f32.mrb[14].mxu1  ;;  %847 = vmatprep.mubr.f32.mxu0 %v4755_v57  ;;  %2608 = vmatpush1.bf16.msra.mxu0 %v3169_v61  ;;  %4932 = vst [vmem:[#allocation16_spill] sm:$0xff] %v3580_v44  ;;  %v4764_v50 = vmax.f32 %v3580_v44, 0.0 }
  0xf6   :  { %v467_v4 = vpop.f32.mrb[15].mxu0  ;;  %v3544_v43 = vpop.f32.mrb[15].mxu1  ;;  %2610 = vmatprep.subr.bf16.mxu0 %v3174_v62  ;;  %v4760_v57 = vmax.f32 %v3548_v49, 0.0  ;;  %4931 = vst [vmem:[#allocation15_spill] sm:$0xff] %v3574_v15  ;;  %v4763_v41 = vmax.f32 %v3574_v15, 0.0 }
  0xf8   :  { %848 = vmatmul.mubr.f32.gmra.mrb[28].mxu0 %v4756_v14  ;;  %v3564_v14 = vadd.f32 %v455_v51, %v351_v21  ;;  %v504_v51 = vpop.permute.xlu1 %503  ;;  %v3590_v21 = vadd.f32 %v459_v29, %v356_v48  ;;  %v3606_v48 = vadd.f32 %v465_v35, %v361_v39 }
  0xf9   :  { %853 = vmatprep.mubr.f32.mxu0 %v4757_v2  ;;  %v3554_v61 = vpop.f32.mrb[16].mxu1  ;;  %2612 = vmatpush1.bf16.msra.mxu0 %v3197_v5 }
  0xfa   :  { %v3560_v62 = vpop.f32.mrb[17].mxu1  ;;  %2614 = vmatprep.subr.bf16.mxu0 %v3202_v7  ;;  %4930 = vst [vmem:[#allocation14_spill] sm:$0xff] %v3564_v14  ;;  %v4761_v2 = vmax.f32 %v3564_v14, 0.0  ;;  %4933 = vst [vmem:[#allocation17_spill] sm:$0xff] %v3590_v21  ;;  %v4765_v29 = vmax.f32 %v3590_v21, 0.0 }
  0xfb   :  { %4935 = vst [vmem:[#allocation19_spill] sm:$0xff] %v3606_v48 }
  0xfc   :  { %854 = vmatmul.mubr.f32.gmra.mrb[30].mxu0 %v4759_v10  ;;  %v509_v10 = vpop.permute.xlu0 %508 }
  0xfd   :  { %859 = vmatprep.mubr.f32.mxu0 %v4760_v57  ;;  %v3570_v5 = vpop.f32.mrb[18].mxu1  ;;  %2616 = vmatpush1.bf16.msra.mxu0 %v3222_v17  ;;  %v3596_v57 = vadd.f32 %v467_v4, %v361_v39  ;;  %v3623_v39 = vadd.f32 %v3488_v26, %v499_v31 }
  0xfe   :  { %v3576_v7 = vpop.f32.mrb[19].mxu1  ;;  %2618 = vmatprep.subr.bf16.mxu0 %v3227_v18 }
  0xff   :  { %4934 = vst [vmem:[#allocation18_spill] sm:$0xff] %v3596_v57  ;;  %v4769_v26 = vmax.f32 %v3623_v39, 0.0 }
 0x100   :  { %860 = vmatmul.mubr.f32.gmra.mrb[32].mxu0 %v4762_v20  ;;  %v1201_v4 = vpop.permute.xlu0 %1200  ;;  %v3612_v20 = vadd.f32 %v3494_v34, %v499_v31 }
 0x101   :  { %865 = vmatprep.mubr.f32.mxu0 %v4761_v2  ;;  %v3586_v17 = vpop.f32.mrb[20].mxu1  ;;  %2620 = vmatpush1.bf16.msra.mxu0 %v3248_v27  ;;  %v514_v2 = vpop.permute.xlu1 %513 }
 0x102   :  { %v3592_v18 = vpop.f32.mrb[21].mxu1  ;;  %2622 = vmatprep.subr.bf16.mxu0 %v3253_v28 }
 0x104   :  { %866 = vmatmul.mubr.f32.gmra.mrb[34].mxu0 %v4763_v41  ;;  %v4766_v41 = vmax.f32 %v3596_v57, 0.0  ;;  %v3669_v57 = vadd.f32 %v3544_v43, %v514_v2 }
 0x105   :  { %871 = vmatprep.mubr.f32.mxu0 %v4764_v50  ;;  %v3602_v27 = vpop.f32.mrb[22].mxu1  ;;  %2624 = vmatpush1.bf16.msra.mxu0 %v3271_v37  ;;  %v1206_v34 = vpop.permute.xlu1 %1205  ;;  %v4768_v50 = vmax.f32 %v3612_v20, 0.0 }
 0x106   :  { %v3608_v28 = vpop.f32.mrb[23].mxu1  ;;  %2626 = vmatprep.subr.bf16.mxu0 %v3276_v38  ;;  %v4767_v38 = vmax.f32 %v3606_v48, 0.0  ;;  %4940 = vst [vmem:[#allocation24_spill] sm:$0xff] %v3669_v57 }
 0x108   :  { %872 = vmatmul.mubr.f32.gmra.mrb[36].mxu0 %v4765_v29  ;;  %v3631_v29 = vadd.f32 %v3512_v30, %v504_v51 }
 0x109   :  { %877 = vmatprep.mubr.f32.mxu0 %v4766_v41  ;;  %v3619_v37 = vpop.f32.mrb[24].mxu1  ;;  %2628 = vmatpush1.bf16.msra.mxu0 %v3294_v45  ;;  %v1211_v41 = vpop.permute.xlu0 %1210 }
 0x10a   :  { %v3626_v35 = vpop.f32.mrb[25].mxu1  ;;  %2630 = vmatprep.subr.bf16.mxu0 %v3299_v46  ;;  %4936 = vst [vmem:[#allocation20_spill] sm:$0xff] %v3631_v29  ;;  %v3642_v46 = vadd.f32 %v3504_v22, %v504_v51  ;;  %v4771_v30 = vmax.f32 %v3631_v29, 0.0 }
 0x10c   :  { %878 = vmatmul.mubr.f32.gmra.mrb[38].mxu0 %v4767_v38  ;;  %4937 = vst [vmem:[#allocation21_spill] sm:$0xff] %v3642_v46  ;;  %v3649_v38 = vadd.f32 %v3528_v8, %v509_v10  ;;  %v4772_v22 = vmax.f32 %v3642_v46, 0.0 }
 0x10d   :  { %883 = vmatprep.mubr.f32.mxu0 %v4768_v50  ;;  %v3637_v45 = vpop.f32.mrb[26].mxu1  ;;  %2632 = vmatpush1.bf16.msra.mxu0 %v3317_v53  ;;  %v3653_v50 = vpop.permute.xlu1 %1215 }
 0x10e   :  { %v3644_v31 = vpop.f32.mrb[27].mxu1  ;;  %2634 = vmatprep.subr.bf16.mxu0 %v3322_v54  ;;  %4938 = vst [vmem:[#allocation22_spill] sm:$0xff] %v3649_v38  ;;  %v3662_v54 = vadd.f32 %v3520_v13, %v509_v10  ;;  %v1512_v8 = vpop.permute.xlu0 %1511 }
 0x110   :  { %884 = vmatmul.mubr.f32.gmra.mrb[40].mxu0 %v4769_v26  ;;  %4939 = vst [vmem:[#allocation23_spill] sm:$0xff] %v3662_v54  ;;  %v4773_v26 = vmax.f32 %v3649_v38, 0.0  ;;  %v4774_v13 = vmax.f32 %v3662_v54, 0.0 }
 0x111   :  { %889 = vmatprep.mubr.f32.mxu0 %v4771_v30  ;;  %v3657_v53 = vpop.f32.mrb[28].mxu1  ;;  %2636 = vmatpush1.bf16.msra.mxu0 %v3343_v59  ;;  %v3685_v43 = vpop.permute.xlu1 %1353  ;;  %v4775_v30 = vmax.f32 %v3669_v57, 0.0 }
 0x112   :  { %v3664_v51 = vpop.f32.mrb[29].mxu1  ;;  %2638 = vmatprep.subr.bf16.mxu0 %v3348_v60  ;;  %v3680_v60 = vadd.f32 %v3536_v55, %v514_v2  ;;  %v3700_v2 = vadd.f32 %v3554_v61, %v1201_v4 }
 0x114   :  { %890 = vmatmul.mubr.f32.gmra.mrb[42].mxu0 %v4772_v22  ;;  %4941 = vst [vmem:[#allocation25_spill] sm:$0xff] %v3680_v60  ;;  %v3689_v22 = vadd.f32 %v3560_v62, %v1201_v4  ;;  %4943 = vst [vmem:[#allocation27_spill] sm:$0xff] %v3700_v2  ;;  %v4782_v61 = vmax.f32 %v3700_v2, 0.0 }
 0x115   :  { %895 = vmatprep.mubr.f32.mxu0 %v4773_v26  ;;  %v3675_v59 = vpop.f32.mrb[30].mxu1  ;;  %2640 = vmatpush1.bf16.msra.mxu0 %v3364_v1  ;;  %v1517_v1 = vpop.permute.xlu0 %1516 }
 0x116   :  { %v3682_v10 = vpop.f32.mrb[31].mxu1  ;;  %2642 = vmatprep.subr.bf16.mxu0 %v3369_v3  ;;  %4942 = vst [vmem:[#allocation26_spill] sm:$0xff] %v3689_v22  ;;  %v4778_v3 = vmax.f32 %v3680_v60, 0.0  ;;  %v4780_v62 = vmax.f32 %v3689_v22, 0.0 }
 0x118   :  { %896 = vmatmul.mubr.f32.gmra.mrb[44].mxu0 %v4774_v13  ;;  %v3707_v13 = vadd.f32 %v3576_v7, %v1206_v34 }
 0x119   :  { %901 = vmatprep.mubr.f32.mxu0 %v4775_v30  ;;  %v3695_v55 = vpop.f32.mrb[32].mxu1  ;;  %2644 = vmatpush1.bf16.msra.mxu0 %v3386_v9  ;;  %v3711_v30 = vpop.permute.xlu1 %1358 }
 0x11a   :  { %v3702_v26 = vpop.f32.mrb[33].mxu1  ;;  %2646 = vmatprep.subr.bf16.mxu0 %v3399_v11  ;;  %4944 = vst [vmem:[#allocation28_spill] sm:$0xff] %v3707_v13  ;;  %v3718_v11 = vadd.f32 %v3570_v5, %v1206_v34  ;;  %v1522_v57 = vpop.permute.xlu0 %1521  ;;  %v4783_v60 = vmax.f32 %v3707_v13, 0.0  ;;  %v3735_v34 = vadd.f32 %v3586_v17, %v1211_v41 }
 0x11c   :  { %902 = vmatmul.mubr.f32.gmra.mrb[46].mxu0 %v4778_v3  ;;  %4945 = vst [vmem:[#allocation29_spill] sm:$0xff] %v3718_v11  ;;  %v3724_v3 = vadd.f32 %v3592_v18, %v1211_v41  ;;  %v4784_v5 = vmax.f32 %v3718_v11, 0.0  ;;  %4949 = vst [vmem:[#allocation33_spill] sm:$0xff] %v3735_v34  ;;  %v3767_v41 = vadd.f32 %v3626_v35, %v3685_v43 }
 0x11d   :  { %v1614_v9 = vpop.f32.mrb[34].mxu1  ;;  %2648 = vmatpush1.bf16.msra.mxu0 %v3408_v24  ;;  %1972 = vmatprep.mubr.f32.mxu0 %v4780_v62 }
 0x11e   :  { %v3720_v4 = vadd.f32 %v1614_v9, %v1512_v8  ;;  %v1616_v7 = vpop.f32.mrb[35].mxu1  ;;  %4947 = vst [vmem:[#allocation31_spill] sm:$0xff] %v3724_v3  ;;  %v4787_v22 = vmax.f32 %v3724_v3, 0.0  ;;  %v1660_v17 = vpop.permute.xlu0 %1659  ;;  %4956 = vst [vmem:[#allocation39_spill] sm:$0xff] %v3767_v41 }
 0x11f   :  { %v3726_v48 = vadd.f32 %v1616_v7, %v1512_v8  ;;  %v1364_v7 = vpop.permute.xlu1 %1363 }
 0x120   :  { %4946 = vst [vmem:[#allocation30_spill] sm:$0xff] %v3720_v4  ;;  %1973 = vmatmul.mubr.f32.vlgmr.msra.gmra.mrb[48].mxu0 %v4782_v61  ;;  %v4785_v9 = vmax.f32 %v3720_v4, 0.0  ;;  %v3743_v61 = vadd.f32 %v3608_v28, %v3653_v50  ;;  %v4788_v28 = vmax.f32 %v3735_v34, 0.0 }
 0x121   :  { %4948 = vst [vmem:[#allocation32_spill] sm:$0xff] %v3726_v48  ;;  %v1620_v62 = vpop.f32.mrb[36].mxu1  ;;  %1978 = vmatprep.mubr.f32.mxu0 %v4783_v60  ;;  %v4953_v60 = vmax.f32 %v3726_v48, 0.0 }
 0x122   :  { %v3738_v18 = vadd.f32 %v1620_v62, %v1517_v1  ;;  %v1622_v8 = vpop.f32.mrb[37].mxu1  ;;  %4951 = vst [vmem:[#allocation35_spill] sm:$0xff] %v3743_v61 }
 0x123   :  { %v3745_v24 = vadd.f32 %v1622_v8, %v1517_v1  ;;  %2026 = vmatprep.mubr.f32.mxu1 %v4953_v60  ;;  %v3759_v1 = vadd.f32 %v3602_v27, %v3653_v50  ;;  %v1369_v50 = vpop.permute.xlu1 %1368  ;;  %v3791_v27 = vadd.f32 %v3644_v31, %v3711_v30 }
 0x124   :  { %4950 = vst [vmem:[#allocation34_spill] sm:$0xff] %v3738_v18  ;;  %1979 = vmatmul.mubr.f32.gmra.mrb[50].mxu0 %v4784_v5  ;;  %2027 = vmatmul.mubr.f32.vlgmr.msra.gmra.mrb[48].mxu1 %v4785_v9  ;;  %v4790_v60 = vmax.f32 %v3738_v18, 0.0  ;;  %v4792_v9 = vmax.f32 %v3743_v61, 0.0 }
 0x125   :  { %4952 = vst [vmem:[#allocation36_spill] sm:$0xff] %v3745_v24  ;;  %v1626_v62 = vpop.f32.mrb[38].mxu1  ;;  %1984 = vmatprep.mubr.f32.mxu0 %v4787_v22  ;;  %4954 = vst [vmem:[#allocation37_spill] sm:$0xff] %v3759_v1  ;;  %v4958_v22 = vmax.f32 %v3745_v24, 0.0  ;;  %v4793_v35 = vmax.f32 %v3759_v1, 0.0  ;;  %v1665_v24 = vpop.permute.xlu0 %1664 }
 0x126   :  { %v3762_v8 = vadd.f32 %v1626_v62, %v1522_v57  ;;  %v1628_v5 = vpop.f32.mrb[39].mxu1  ;;  %4961 = vst [vmem:[#allocation43_spill] sm:$0xff] %v3791_v27 }
 0x127   :  { %v3769_v2 = vadd.f32 %v1628_v5, %v1522_v57  ;;  %2032 = vmatprep.mubr.f32.mxu1 %v4958_v22  ;;  %v3783_v57 = vadd.f32 %v3619_v37, %v3685_v43  ;;  %v3814_v37 = vadd.f32 %v3664_v51, %v1364_v7 }
 0x128   :  { %4955 = vst [vmem:[#allocation38_spill] sm:$0xff] %v3762_v8  ;;  %1985 = vmatmul.mubr.f32.gmra.mrb[52].mxu0 %v4788_v28  ;;  %2033 = vmatmul.mubr.f32.gmra.mrb[50].mxu1 %v4790_v60  ;;  %v4794_v22 = vmax.f32 %v3762_v8, 0.0  ;;  %v4796_v60 = vmax.f32 %v3767_v41, 0.0 }
 0x129   :  { %4957 = vst [vmem:[#allocation40_spill] sm:$0xff] %v3769_v2  ;;  %v1761_v62 = vpop.f32.mrb[40].mxu1  ;;  %1990 = vmatprep.mubr.f32.mxu0 %v4792_v9  ;;  %4959 = vst [vmem:[#allocation41_spill] sm:$0xff] %v3783_v57  ;;  %v4963_v9 = vmax.f32 %v3769_v2, 0.0  ;;  %v4797_v31 = vmax.f32 %v3783_v57, 0.0  ;;  %v4811_v8 = vmax.f32 %v3814_v37, 0.0 }
 0x12a   :  { %v3786_v5 = vadd.f32 %v1761_v62, %v1660_v17  ;;  %v1763_v28 = vpop.f32.mrb[41].mxu1  ;;  %4966 = vst [vmem:[#allocation47_spill] sm:$0xff] %v3814_v37 }
 0x12b   :  { %v3793_v61 = vadd.f32 %v1763_v28, %v1660_v17  ;;  %2038 = vmatprep.mubr.f32.mxu1 %v4963_v9  ;;  %v3807_v17 = vadd.f32 %v3637_v45, %v3711_v30  ;;  %v1670_v45 = vpop.permute.xlu0 %1669 }
 0x12c   :  { %4960 = vst [vmem:[#allocation42_spill] sm:$0xff] %v3786_v5  ;;  %1991 = vmatmul.mubr.f32.gmra.mrb[54].mxu0 %v4793_v35  ;;  %2039 = vmatmul.mubr.f32.gmra.mrb[52].mxu1 %v4794_v22  ;;  %v4799_v9 = vmax.f32 %v3786_v5, 0.0  ;;  %v1507_v35 = vpop.permute.xlu1 %1506  ;;  %v4801_v22 = vmax.f32 %v3791_v27, 0.0 }
 0x12d   :  { %4962 = vst [vmem:[#allocation44_spill] sm:$0xff] %v3793_v61  ;;  %v1767_v43 = vpop.f32.mrb[42].mxu1  ;;  %1996 = vmatprep.mubr.f32.mxu0 %v4796_v60  ;;  %4964 = vst [vmem:[#allocation45_spill] sm:$0xff] %v3807_v17  ;;  %v4968_v60 = vmax.f32 %v3793_v61, 0.0  ;;  %v4802_v51 = vmax.f32 %v3807_v17, 0.0 }
 0x12e   :  { %v3810_v28 = vadd.f32 %v1767_v43, %v1665_v24  ;;  %v1769_v62 = vpop.f32.mrb[43].mxu1 }
 0x12f   :  { %v3816_v2 = vadd.f32 %v1769_v62, %v1665_v24  ;;  %2044 = vmatprep.mubr.f32.mxu1 %v4968_v60  ;;  %v3829_v24 = vadd.f32 %v3657_v53, %v1364_v7 }
 0x130   :  { %4965 = vst [vmem:[#allocation46_spill] sm:$0xff] %v3810_v28  ;;  %1997 = vmatmul.mubr.f32.gmra.mrb[56].mxu0 %v4797_v31  ;;  %2045 = vmatmul.mubr.f32.gmra.mrb[54].mxu1 %v4799_v9  ;;  %v4803_v60 = vmax.f32 %v3810_v28, 0.0  ;;  %v3836_v9 = vadd.f32 %v3682_v10, %v1369_v50  ;;  %v1675_v53 = vpop.permute.xlu1 %1674 }
 0x131   :  { %4967 = vst [vmem:[#allocation48_spill] sm:$0xff] %v3816_v2  ;;  %v1773_v43 = vpop.f32.mrb[44].mxu1  ;;  %2002 = vmatprep.mubr.f32.mxu0 %v4801_v22  ;;  %4969 = vst [vmem:[#allocation49_spill] sm:$0xff] %v3829_v24  ;;  %v4973_v1 = vmax.f32 %v3816_v2, 0.0  ;;  %v4812_v10 = vmax.f32 %v3829_v24, 0.0 }
 0x132   :  { %v3832_v62 = vadd.f32 %v1773_v43, %v1670_v45  ;;  %v1775_v31 = vpop.f32.mrb[45].mxu1  ;;  %4971 = vst [vmem:[#allocation51_spill] sm:$0xff] %v3836_v9 }
 0x133   :  { %v3838_v30 = vadd.f32 %v1775_v31, %v1670_v45  ;;  %2050 = vmatprep.mubr.f32.mxu1 %v4973_v1  ;;  %v3851_v31 = vadd.f32 %v3675_v59, %v1369_v50 }
 0x134   :  { %4970 = vst [vmem:[#allocation50_spill] sm:$0xff] %v3832_v62  ;;  %2003 = vmatmul.mubr.f32.gmra.mrb[58].mxu0 %v4802_v51  ;;  %2051 = vmatmul.mubr.f32.gmra.mrb[56].mxu1 %v4803_v60  ;;  %v4807_v1 = vmax.f32 %v3832_v62, 0.0  ;;  %v4805_v51 = vmax.f32 %v3836_v9, 0.0  ;;  %v3858_v60 = vadd.f32 %v3702_v26, %v1507_v35  ;;  %v3873_v26 = vadd.f32 %v3695_v55, %v1507_v35 }
 0x135   :  { %4972 = vst [vmem:[#allocation52_spill] sm:$0xff] %v3838_v30  ;;  %v1779_v43 = vpop.f32.mrb[46].mxu1  ;;  %2008 = vmatprep.mubr.f32.mxu0 %v4811_v8  ;;  %4974 = vst [vmem:[#allocation53_spill] sm:$0xff] %v3851_v31  ;;  %v4978_v61 = vmax.f32 %v3838_v30, 0.0  ;;  %v4808_v50 = vmax.f32 %v3851_v31, 0.0  ;;  %v737_v55 = vlaneseq }
 0x136   :  { %v3854_v45 = vadd.f32 %v1779_v43, %v1675_v53  ;;  %v1781_v22 = vpop.f32.mrb[47].mxu1  ;;  %4976 = vst [vmem:[#allocation55_spill] sm:$0xff] %v3858_v60  ;;  %4979 = vst [vmem:[#allocation57_spill] sm:$0xff] %v3873_v26 }
 0x137   :  { %v3860_v7 = vadd.f32 %v1781_v22, %v1675_v53  ;;  %2056 = vmatprep.mubr.f32.mxu1 %v4978_v61  ;;  %v4810_v61 = vmax.f32 %v3858_v60, 0.0  ;;  %v4813_v53 = vmax.f32 %v3873_v26, 0.0 }
 0x138   :  { %4975 = vst [vmem:[#allocation54_spill] sm:$0xff] %v3854_v45  ;;  %2009 = vmatmul.mubr.f32.gmra.mrb[60].mxu0 %v4812_v10  ;;  %2057 = vmatmul.mubr.f32.gmra.mrb[58].mxu1 %v4807_v1  ;;  %v4809_v22 = vmax.f32 %v3854_v45, 0.0 }
 0x139   :  { %4977 = vst [vmem:[#allocation56_spill] sm:$0xff] %v3860_v7  ;;  %v4806_v59 = vmax.f32 %v3860_v7, 0.0  ;;  %2014 = vmatprep.mubr.f32.mxu0 %v4805_v51  ;;  %v3888_v51 = vshrl.u32 %v737_v55, 7 }
 0x13b   :  { %2062 = vmatprep.mubr.f32.mxu1 %v4806_v59 }
 0x13c   :  { %2015 = vmatmul.mubr.f32.gmra.mrb[62].mxu0 %v4808_v50  ;;  %2063 = vmatmul.mubr.f32.gmra.mrb[60].mxu1 %v4809_v22  ;;  %v4821_v50 = vsub.s32 0, %v3888_v51  ;;  %v735_v22 = vld [vmem:[%s4740_s4] sm:$0x3] }
 0x13d   :  { %2020 = vmatprep.mubr.f32.mxu0 %v4810_v61  ;;  %v4823_v61 = vsub.s32 1, %v3888_v51 }
 0x13f   :  { %v3901_v55 = vrot.slane %v735_v22, %v4823_v61 }
 0x140   :  { %2021 = vmatmul.mubr.f32.gmra.mrb[64].mxu0 %v4813_v53  ;;  %v3897_v53 = vrot.slane %v735_v22, %v4821_v50 }
 0x1b3   :  { %v813_v35 = vpop.f32.mrb[16].mxu0 }
 0x1b4   :  { %v815_v43 = vpop.f32.mrb[17].mxu0  ;;  %v3904_v9 = vadd.f32 %v813_v35, %v3897_v53 }
 0x1b5   :  { %v3907_v31 = vadd.f32 %v815_v43, %v3901_v55 }
 0x1b6   :  { %v4831_v41 = vmax.f32 %v3904_v9, 0.0 }
 0x1b7   :  { %v819_v59 = vpop.f32.mrb[18].mxu0  ;;  %v4834_v35 = vmax.f32 %v3907_v31, 0.0 }
 0x1b8   :  { %v821_v1 = vpop.f32.mrb[19].mxu0  ;;  %v3917_v22 = vadd.f32 %v819_v59, %v3897_v53 }
 0x1b9   :  { %v3922_v43 = vadd.f32 %v821_v1, %v3901_v55 }
 0x1ba   :  { %v4839_v18 = vmax.f32 %v3917_v22, 0.0 }
 0x1bb   :  { %v825_v8 = vpop.f32.mrb[20].mxu0 }
 0x1bc   :  { %v827_v10 = vpop.f32.mrb[21].mxu0  ;;  %v3941_v37 = vadd.f32 %v825_v8, %v3897_v53 }
 0x1be   :  { %v4847_v34 = vmax.f32 %v3941_v37, 0.0 }
 0x1bf   :  { %v831_v7 = vpop.f32.mrb[22].mxu0 }
 0x1c0   :  { %v833_v45 = vpop.f32.mrb[23].mxu0  ;;  %v3965_v2 = vadd.f32 %v831_v7, %v3897_v53 }
 0x1c2   :  { %v4859_v4 = vmax.f32 %v3965_v2, 0.0 }
 0x1c3   :  { %v837_v5 = vpop.f32.mrb[24].mxu0 }
 0x1c4   :  { %v3910_v60 = vadd.f32 %v837_v5, %v3897_v53  ;;  %v839_v26 = vpop.f32.mrb[25].mxu0 }
 0x1c5   :  { %v3913_v50 = vadd.f32 %v839_v26, %v3901_v55 }
 0x1c6   :  { %v4830_v61 = vmax.f32 %v3910_v60, 0.0  ;;  %v4981_v14 = vmax.f32 %v3910_v60, 0.0  ;;  %v4984_v60 = vsub.s32 0, %v3888_v51 }
 0x1c7   :  { %v4833_v57 = vmax.f32 %v3913_v50, 0.0  ;;  %v843_v5 = vpop.f32.mrb[26].mxu0 }
 0x1c8   :  { %v940_v26 = vmax.f32 %v4831_v41, %v4830_v61  ;;  %v3930_v30 = vadd.f32 %v843_v5, %v3897_v53  ;;  %v845_v59 = vpop.f32.mrb[27].mxu0  ;;  %v4842_v61 = vmax.f32 %v3922_v43, 0.0  ;;  %v3946_v5 = vadd.f32 %v827_v10, %v3901_v55 }
 0x1c9   :  { %v941_v62 = vmax.f32 %v4834_v35, %v4833_v57  ;;  %v3937_v1 = vadd.f32 %v845_v59, %v3901_v55 }
 0x1ca   :  { %v4838_v24 = vmax.f32 %v3930_v30, 0.0 }
 0x1cb   :  { %v4841_v41 = vmax.f32 %v3937_v1, 0.0  ;;  %v849_v3 = vpop.f32.mrb[28].mxu0 }
 0x1cc   :  { %v942_v59 = vmax.f32 %v4839_v18, %v4838_v24  ;;  %v3954_v57 = vadd.f32 %v849_v3, %v3897_v53  ;;  %v851_v8 = vpop.f32.mrb[29].mxu0  ;;  %v4850_v24 = vmax.f32 %v3946_v5, 0.0  ;;  %v3970_v3 = vadd.f32 %v833_v45, %v3901_v55 }
 0x1cd   :  { %v943_v35 = vmax.f32 %v4842_v61, %v4841_v41  ;;  %v3961_v10 = vadd.f32 %v851_v8, %v3901_v55 }
 0x1ce   :  { %v4846_v28 = vmax.f32 %v3954_v57, 0.0  ;;  %v4862_v17 = vmax.f32 %v3970_v3, 0.0 }
 0x1cf   :  { %v4849_v18 = vmax.f32 %v3961_v10, 0.0  ;;  %v855_v48 = vpop.f32.mrb[30].mxu0 }
 0x1d0   :  { %v944_v8 = vmax.f32 %v4847_v34, %v4846_v28  ;;  %v3978_v41 = vadd.f32 %v855_v48, %v3897_v53  ;;  %v857_v7 = vpop.f32.mrb[31].mxu0 }
 0x1d1   :  { %v945_v61 = vmax.f32 %v4850_v24, %v4849_v18  ;;  %v3985_v45 = vadd.f32 %v857_v7, %v3901_v55 }
 0x1d2   :  { %v4858_v27 = vmax.f32 %v3978_v41, 0.0 }
 0x1d3   :  { %v4861_v28 = vmax.f32 %v3985_v45, 0.0  ;;  %v861_v34 = vpop.f32.mrb[32].mxu0 }
 0x1d4   :  { %v946_v48 = vmax.f32 %v4859_v4, %v4858_v27  ;;  %v862_v13 = vadd.f32 %v861_v34, %v3897_v53  ;;  %v863_v18 = vpop.f32.mrb[33].mxu0 }
 0x1d5   :  { %v947_v7 = vmax.f32 %v4862_v17, %v4861_v28  ;;  %v864_v24 = vadd.f32 %v863_v18, %v3901_v55 }
 0x1d6   :  { %v924_v11 = vmax.f32 %v862_v13, 0.0 }
 0x1d7   :  { %v925_v58 = vmax.f32 %v864_v24, 0.0  ;;  %v867_v56 = vpop.f32.mrb[34].mxu0 }
 0x1d8   :  { %v948_v16 = vmax.f32 %v940_v26, %v924_v11  ;;  %v4002_v23 = vadd.f32 %v867_v56, %v3897_v53  ;;  %v869_v38 = vpop.f32.mrb[35].mxu0 }
 0x1d9   :  { %v949_v54 = vmax.f32 %v941_v62, %v925_v58  ;;  %v4005_v27 = vadd.f32 %v869_v38, %v3901_v55 }
 0x1da   :  { %v4863_v34 = vmax.f32 %v4002_v23, 0.0 }
 0x1db   :  { %v4864_v4 = vmax.f32 %v4005_v27, 0.0  ;;  %v873_v44 = vpop.f32.mrb[36].mxu0 }
 0x1dc   :  { %v950_v18 = vmax.f32 %v942_v59, %v4863_v34  ;;  %v4012_v13 = vadd.f32 %v873_v44, %v3897_v53  ;;  %v875_v24 = vpop.f32.mrb[37].mxu0 }
 0x1dd   :  { %v951_v56 = vmax.f32 %v943_v35, %v4864_v4  ;;  %v4017_v62 = vadd.f32 %v875_v24, %v3901_v55 }
 0x1de   :  { %v4867_v38 = vmax.f32 %v4012_v13, 0.0 }
 0x1df   :  { %v4868_v26 = vmax.f32 %v4017_v62, 0.0  ;;  %v879_v28 = vpop.f32.mrb[38].mxu0 }
 0x1e0   :  { %v952_v17 = vmax.f32 %v944_v8, %v4867_v38  ;;  %v4024_v59 = vadd.f32 %v879_v28, %v3897_v53  ;;  %v881_v44 = vpop.f32.mrb[39].mxu0 }
 0x1e1   :  { %v4028_v34 = vmax.f32 %v945_v61, %v4868_v26  ;;  %v4031_v35 = vadd.f32 %v881_v44, %v3901_v55 }
 0x1e2   :  { %v4874_v24 = vmax.f32 %v4024_v59, 0.0 }
 0x1e3   :  { %v4877_v4 = vmax.f32 %v4031_v35, 0.0  ;;  %v885_v21 = vpop.f32.mrb[40].mxu0 }
 0x1e4   :  { %v4037_v36 = vmax.f32 %v946_v48, %v4874_v24  ;;  %v886_v28 = vadd.f32 %v885_v21, %v3897_v53  ;;  %v887_v8 = vpop.f32.mrb[41].mxu0  ;;  %v4980_v24 = vmax.f32 %v3904_v9, 0.0 }
 0x1e5   :  { %v4042_v38 = vmax.f32 %v947_v7, %v4877_v4  ;;  %v888_v61 = vadd.f32 %v887_v8, %v3901_v55 }
 0x1e6   :  { %v932_v44 = vmax.f32 %v886_v28, 0.0  ;;  %v1896_v28 = vld [vmem:[%s4740_s4] sm:$0x3] }
 0x1e7   :  { %v933_v26 = vmax.f32 %v888_v61, 0.0  ;;  %v891_v42 = vpop.f32.mrb[42].mxu0 }
 0x1e8   :  { %v956_v0 = vmax.f32 %v948_v16, %v932_v44  ;;  %v893_v63 = vpop.f32.mrb[43].mxu0  ;;  %v892_v46 = vadd.f32 %v891_v42, %v3897_v53  ;;  %v4982_v16 = vmax.f32 %v3907_v31, 0.0  ;;  %v4985_v31 = vsub.s32 1, %v3888_v51 }
 0x1e9   :  { %v957_v29 = vmax.f32 %v949_v54, %v933_v26  ;;  %v894_v48 = vadd.f32 %v893_v63, %v3901_v55  ;;  %v4983_v54 = vmax.f32 %v3913_v50, 0.0 }
 0x1ea   :  { %v964_v21 = vsub.f32 %v4980_v24, %v956_v0  ;;  %v1012_v15 = vsub.f32 %v4981_v14, %v956_v0  ;;  %v1060_v7 = vsub.f32 %v924_v11, %v956_v0  ;;  %v1108_v4 = vsub.f32 %v932_v44, %v956_v0 }
 0x1eb   :  { %v965_v8 = vsub.f32 %v4982_v16, %v957_v29  ;;  %v1013_v42 = vsub.f32 %v4983_v54, %v957_v29  ;;  %v1061_v61 = vsub.f32 %v925_v58, %v957_v29  ;;  %v1109_v63 = vsub.f32 %v933_v26, %v957_v29  ;;  %v897_v19 = vpop.f32.mrb[44].mxu0 }
 0x1ec   :  { %v972_v9 = vmul.f32 1.442695, %v964_v21  ;;  %v1020_v24 = vmul.f32 1.442695, %v1012_v15  ;;  %v1068_v33 = vmul.f32 1.442695, %v1060_v7  ;;  %v898_v14 = vadd.f32 %v897_v19, %v3897_v53 }
 0x1ed   :  { %v1116_v11 = vmul.f32 1.442695, %v1108_v4  ;;  %v974_v0 = vmul.f32 1.442695, %v965_v8  ;;  %v4061_v44 = vrot.slane %v1896_v28, %v4984_v60  ;;  %v4065_v16 = vrot.slane %v1896_v28, %v4985_v31  ;;  %v899_v26 = vpop.f32.mrb[45].mxu0 }
 0x1ee   :  { %2701 = vpow2.f32 %v972_v9  ;;  %v1022_v50 = vmul.f32 1.442695, %v1013_v42  ;;  %v1070_v58 = vmul.f32 1.442695, %v1061_v61  ;;  %v934_v29 = vmax.f32 %v892_v46, 0.0 }
 0x1ef   :  { %2703 = vpow2.f32 %v1020_v24  ;;  %v935_v15 = vmax.f32 %v894_v48, 0.0  ;;  %v936_v21 = vmax.f32 %v898_v14, 0.0  ;;  %v4068_v19 = vadd.f32 %v899_v26, %v3901_v55  ;;  %v903_v4 = vpop.f32.mrb[46].mxu0 }
 0x1f0   :  { %2705 = vpow2.f32 %v1068_v33  ;;  %v1118_v7 = vmul.f32 1.442695, %v1109_v63  ;;  %v958_v8 = vmax.f32 %v950_v18, %v934_v29  ;;  %v4071_v54 = vadd.f32 %v903_v4, %v3897_v53  ;;  %v905_v51 = vpop.f32.mrb[47].mxu0 }
 0x1f1   :  { %2707 = vpow2.f32 %v1116_v11  ;;  %v959_v28 = vmax.f32 %v951_v56, %v935_v15  ;;  %v960_v42 = vmax.f32 %v952_v17, %v936_v21  ;;  %v937_v46 = vmax.f32 %v4068_v19, 0.0 }
 0x1f2   :  { %2709 = vpow2.f32 %v974_v0  ;;  %v4986_v48 = vmax.f32 %v3917_v22, 0.0  ;;  %v4987_v9 = vmax.f32 %v3930_v30, 0.0  ;;  %v4988_v33 = vmax.f32 %v4002_v23, 0.0 }
 0x1f3   :  { %2711 = vpow2.f32 %v1022_v50  ;;  %v1110_v18 = vsub.f32 %v934_v29, %v958_v8  ;;  %v4989_v53 = vmax.f32 %v3922_v43, 0.0  ;;  %v4990_v56 = vmax.f32 %v3937_v1, 0.0  ;;  %v1974_v11 = vpop.f32.mrb[48].mxu0 }
 0x1f4   :  { %v966_v61 = vsub.f32 %v4986_v48, %v958_v8  ;;  %v1014_v24 = vsub.f32 %v4987_v9, %v958_v8  ;;  %v1062_v63 = vsub.f32 %v4988_v33, %v958_v8  ;;  %2713 = vpow2.f32 %v1070_v58  ;;  %v1976_v4 = vpop.f32.mrb[49].mxu0 }
 0x1f5   :  { %v967_v14 = vsub.f32 %v4989_v53, %v959_v28  ;;  %v1015_v17 = vsub.f32 %v4990_v56, %v959_v28  ;;  %2715 = vpow2.f32 %v1118_v7  ;;  %v1120_v31 = vmul.f32 1.442695, %v1110_v18 }
 0x1f6   :  { %v976_v0 = vmul.f32 1.442695, %v966_v61  ;;  %v1024_v60 = vmul.f32 1.442695, %v1014_v24  ;;  %v1072_v22 = vmul.f32 1.442695, %v1062_v63  ;;  %v1111_v29 = vsub.f32 %v935_v15, %v959_v28 }
 0x1f7   :  { %v978_v30 = vmul.f32 1.442695, %v967_v14  ;;  %v1026_v26 = vmul.f32 1.442695, %v1015_v17  ;;  %v4991_v23 = vmax.f32 %v4005_v27, 0.0  ;;  %v4992_v43 = vmax.f32 %v3941_v37, 0.0 }
 0x1f8   :  { %2717 = vpow2.f32 %v976_v0  ;;  %v4993_v1 = vmax.f32 %v3954_v57, 0.0  ;;  %v4994_v8 = vmax.f32 %v4012_v13, 0.0  ;;  %v1112_v7 = vsub.f32 %v936_v21, %v960_v42  ;;  %v1980_v61 = vpop.f32.mrb[50].mxu0  ;;  %v4092_v9 = vpop.f32.mrb[48].mxu1 }
 0x1f9   :  { %v1063_v50 = vsub.f32 %v4991_v23, %v959_v28  ;;  %v968_v19 = vsub.f32 %v4992_v43, %v960_v42  ;;  %2719 = vpow2.f32 %v1024_v60  ;;  %v4094_v24 = vpop.eup %2701  ;;  %v1122_v15 = vmul.f32 1.442695, %v1111_v29  ;;  %v4103_v53 = vpop.f32.mrb[51].mxu0 }
 0x1fa   :  { %v1016_v58 = vsub.f32 %v4993_v1, %v960_v42  ;;  %v1064_v48 = vsub.f32 %v4994_v8, %v960_v42  ;;  %2721 = vpow2.f32 %v1072_v22  ;;  %v4096_v37 = vpop.eup %2703  ;;  %v1124_v57 = vmul.f32 1.442695, %v1112_v7  ;;  %v4105_v14 = vpop.f32.mrb[49].mxu1 }
 0x1fb   :  { %v1074_v27 = vmul.f32 1.442695, %v1063_v50  ;;  %v980_v28 = vmul.f32 1.442695, %v968_v19  ;;  %2723 = vpow2.f32 %v1120_v31  ;;  %v4098_v18 = vpop.eup %2705  ;;  %v961_v13 = vmax.f32 %v4028_v34, %v937_v46  ;;  %v4118_v34 = vpop.f32.mrb[52].mxu0 }
 0x1fc   :  { %v1028_v33 = vmul.f32 1.442695, %v1016_v58  ;;  %v1076_v63 = vmul.f32 1.442695, %v1064_v48  ;;  %2725 = vpow2.f32 %v978_v30  ;;  %v938_v21 = vmax.f32 %v4071_v54, 0.0  ;;  %v4107_v56 = vpop.eup %2707  ;;  %v4120_v54 = vpop.f32.mrb[50].mxu1 }
 0x1fd   :  { %v906_v42 = vadd.f32 %v905_v51, %v3901_v55  ;;  %2727 = vpow2.f32 %v1026_v26  ;;  %v4110_v17 = vadd.f32 %v1974_v11, %v4061_v44  ;;  %v4113_v0 = vadd.f32 %v1976_v4, %v4065_v16  ;;  %v4122_v55 = vpop.eup %2709  ;;  %v4130_v23 = vpop.f32.mrb[53].mxu0 }
 0x1fe   :  { %v4116_v60 = vadd.f32 %v1980_v61, %v4061_v44  ;;  %2729 = vpow2.f32 %v1074_v27  ;;  %v4997_v51 = vmax.f32 %v3946_v5, 0.0  ;;  %v4998_v31 = vmax.f32 %v3961_v10, 0.0  ;;  %v4132_v50 = vpop.f32.mrb[51].mxu1  ;;  %v4134_v29 = vpop.eup %2711 }
 0x1ff   :  { %4995 = vst [vmem:[#allocation58_spill] sm:$0xff] %v4110_v17  ;;  %4996 = vst [vmem:[#allocation59_spill] sm:$0xff] %v4113_v0  ;;  %v4999_v30 = vmax.f32 %v4017_v62, 0.0  ;;  %2731 = vpow2.f32 %v1122_v15  ;;  %v1113_v43 = vsub.f32 %v937_v46, %v961_v13  ;;  %v962_v19 = vmax.f32 %v4037_v36, %v938_v21  ;;  %v4137_v1 = vpop.eup %2713  ;;  %v4145_v46 = vpop.f32.mrb[54].mxu0 }
 0x200   :  { %v969_v22 = vsub.f32 %v4997_v51, %v961_v13  ;;  %v1017_v11 = vsub.f32 %v4998_v31, %v961_v13  ;;  %v939_v4 = vmax.f32 %v906_v42, 0.0  ;;  %2733 = vpow2.f32 %v980_v28  ;;  %v4139_v8 = vpop.eup %2715  ;;  %v4147_v36 = vpop.f32.mrb[52].mxu1 }
 0x201   :  { %v1065_v26 = vsub.f32 %v4999_v30, %v961_v13  ;;  %2735 = vpow2.f32 %v1028_v33  ;;  %v1126_v62 = vmul.f32 1.442695, %v1113_v43  ;;  %v5000_v48 = vmax.f32 %v3965_v2, 0.0  ;;  %v1994_v51 = vpop.f32.mrb[55].mxu0 }
 0x202   :  { %v982_v5 = vmul.f32 1.442695, %v969_v22  ;;  %v1030_v10 = vmul.f32 1.442695, %v1017_v11  ;;  %v5001_v61 = vmax.f32 %v3978_v41, 0.0  ;;  %v4149_v15 = vpop.eup %2717  ;;  %2737 = vpow2.f32 %v1076_v63  ;;  %v2042_v22 = vpop.f32.mrb[53].mxu1 }
 0x203   :  { %v1078_v58 = vmul.f32 1.442695, %v1065_v26  ;;  %v970_v7 = vsub.f32 %v5000_v48, %v962_v19  ;;  %5002 = vst [vmem:[#allocation60_spill] sm:$0xff] %v4149_v15  ;;  %v5003_v28 = vmax.f32 %v4024_v59, 0.0  ;;  %v1114_v42 = vsub.f32 %v938_v21, %v962_v19  ;;  %v4154_v2 = vpop.eup %2719 }
 0x204   :  { %v1018_v27 = vsub.f32 %v5001_v61, %v962_v19  ;;  %v963_v33 = vmax.f32 %v4042_v38, %v939_v4  ;;  %5004 = vst [vmem:[#allocation61_spill] sm:$0xff] %v4154_v2  ;;  %2739 = vpow2.f32 %v1124_v57  ;;  %v4157_v30 = vpop.eup %2721  ;;  %v5006_v59 = vmax.f32 %v3970_v3, 0.0  ;;  %v1998_v61 = vpop.f32.mrb[56].mxu0 }
 0x205   :  { %v1066_v13 = vsub.f32 %v5003_v28, %v962_v19  ;;  %v984_v41 = vmul.f32 1.442695, %v970_v7  ;;  %5005 = vst [vmem:[#allocation62_spill] sm:$0xff] %v4157_v30  ;;  %2741 = vpow2.f32 %v982_v5  ;;  %v1128_v63 = vmul.f32 1.442695, %v1114_v42  ;;  %v4161_v21 = vpop.eup %2723  ;;  %v2000_v42 = vpop.f32.mrb[57].mxu0 }
 0x206   :  { %v1032_v31 = vmul.f32 1.442695, %v1018_v27  ;;  %v971_v43 = vsub.f32 %v5006_v59, %v963_v33  ;;  %5007 = vst [vmem:[#allocation63_spill] sm:$0xff] %v4161_v21  ;;  %2743 = vpow2.f32 %v1030_v10  ;;  %v5008_v38 = vmax.f32 %v3985_v45, 0.0  ;;  %v2046_v27 = vpop.f32.mrb[54].mxu1  ;;  %v4167_v28 = vpop.eup %2725 }
 0x207   :  { %v1080_v26 = vmul.f32 1.442695, %v1066_v13  ;;  %v5009_v57 = vmax.f32 %v4031_v35, 0.0  ;;  %v1115_v7 = vsub.f32 %v939_v4, %v963_v33  ;;  %5010 = vst [vmem:[#allocation64_spill] sm:$0xff] %v4167_v28  ;;  %2745 = vpow2.f32 %v1078_v58  ;;  %v2048_v59 = vpop.f32.mrb[55].mxu1  ;;  %v4171_v10 = vpop.eup %2727 }
 0x208   :  { %v1019_v19 = vsub.f32 %v5008_v38, %v963_v33  ;;  %v986_v5 = vmul.f32 1.442695, %v971_v43  ;;  %5011 = vst [vmem:[#allocation65_spill] sm:$0xff] %v4171_v10  ;;  %2747 = vpow2.f32 %v1126_v62  ;;  %v4177_v4 = vadd.f32 %v4092_v9, %v4061_v44 }
 0x209   :  { %v1067_v48 = vsub.f32 %v5009_v57, %v963_v33  ;;  %v1130_v35 = vmul.f32 1.442695, %v1115_v7  ;;  %v4173_v57 = vpop.eup %2729  ;;  %2749 = vpow2.f32 %v984_v41  ;;  %v4181_v58 = vadd.f32 %v4103_v53, %v4065_v16  ;;  %v2004_v53 = vpop.f32.mrb[58].mxu0 }
 0x20a   :  { %v1034_v45 = vmul.f32 1.442695, %v1019_v19  ;;  %5012 = vst [vmem:[#allocation66_spill] sm:$0xff] %v4173_v57  ;;  %v4185_v33 = vadd.f32 %v4105_v14, %v4065_v16  ;;  %v4187_v43 = vpop.eup %2731  ;;  %2751 = vpow2.f32 %v1032_v31  ;;  %v4191_v62 = vadd.f32 %v4118_v34, %v4061_v44  ;;  %v2052_v19 = vpop.f32.mrb[56].mxu1 }
 0x20b   :  { %v1082_v38 = vmul.f32 1.442695, %v1067_v48  ;;  %5013 = vst [vmem:[#allocation67_spill] sm:$0xff] %v4187_v43  ;;  %v4195_v41 = vadd.f32 %v4120_v54, %v4061_v44  ;;  %v4199_v9 = vadd.f32 %v4130_v23, %v4065_v16  ;;  %v4201_v48 = vpop.eup %2733  ;;  %2753 = vpow2.f32 %v1080_v26  ;;  %v2006_v7 = vpop.f32.mrb[59].mxu0 }
 0x20c   :  { %5014 = vst [vmem:[#allocation68_spill] sm:$0xff] %v4201_v48  ;;  %v2054_v3 = vpop.f32.mrb[57].mxu1  ;;  %v4206_v13 = vpop.eup %2735  ;;  %2755 = vpow2.f32 %v1128_v63  ;;  %v4215_v26 = vadd.f32 %v4132_v50, %v4065_v16  ;;  %v4219_v34 = vadd.f32 %v4145_v46, %v4061_v44  ;;  %v4223_v63 = vadd.f32 %v4147_v36, %v4061_v44 }
 0x20d   :  { %5015 = vst [vmem:[#allocation69_spill] sm:$0xff] %v4206_v13  ;;  %v4211_v43 = vpop.eup %2737  ;;  %2757 = vpow2.f32 %v986_v5  ;;  %v4228_v23 = vadd.f32 %v1994_v51, %v4065_v16  ;;  %v4231_v5 = vadd.f32 %v2042_v22, %v4065_v16  ;;  %v4234_v50 = vadd.f32 %v1998_v61, %v4061_v44  ;;  %v2010_v11 = vpop.f32.mrb[60].mxu0 }
 0x20e   :  { %5016 = vst [vmem:[#allocation70_spill] sm:$0xff] %v4211_v43  ;;  %v4225_v54 = vpop.eup %2739  ;;  %2759 = vpow2.f32 %v1034_v45  ;;  %v2058_v14 = vpop.f32.mrb[58].mxu1  ;;  %v4252_v36 = vadd.f32 %v2000_v42, %v4065_v16  ;;  %v4255_v45 = vadd.f32 %v2048_v59, %v4065_v16  ;;  %v2005_v31 = vadd.f32 %v2004_v53, %v4061_v44 }
 0x20f   :  { %5017 = vst [vmem:[#allocation71_spill] sm:$0xff] %v4225_v54  ;;  %5018 = vst [vmem:[#allocation72_spill] sm:$0xff] %v4228_v23  ;;  %v4236_v46 = vpop.eup %2741  ;;  %2761 = vpow2.f32 %v1082_v38  ;;  %v2012_v54 = vpop.f32.mrb[61].mxu0  ;;  %v4892_v13 = vmax.f32 %v4234_v50, 0.0  ;;  %v4249_v38 = vadd.f32 %v2046_v27, %v4061_v44  ;;  %v5028_v61 = vmax.f32 %v4110_v17, 0.0 }
 0x210   :  { %5019 = vst [vmem:[#allocation73_spill] sm:$0xff] %v4231_v5  ;;  %5020 = vst [vmem:[#allocation74_spill] sm:$0xff] %v4234_v50  ;;  %v2060_v51 = vpop.f32.mrb[59].mxu1  ;;  %v4241_v43 = vpop.eup %2743  ;;  %2763 = vpow2.f32 %v1130_v35  ;;  %v2007_v27 = vadd.f32 %v2006_v7, %v4065_v16  ;;  %v2055_v42 = vadd.f32 %v2054_v3, %v4065_v16  ;;  %v2079_v21 = vmax.f32 %v2005_v31, 0.0 }
 0x211   :  { %5021 = vst [vmem:[#allocation75_spill] sm:$0xff] %v4236_v46  ;;  %5022 = vst [vmem:[#allocation76_spill] sm:$0xff] %v4241_v43  ;;  %v4246_v48 = vpop.eup %2745  ;;  %v4264_v22 = vmax.f32 %v5028_v61, %v4892_v13  ;;  %v2016_v43 = vpop.f32.mrb[62].mxu0  ;;  %v2011_v5 = vadd.f32 %v2010_v11, %v4061_v44  ;;  %v5033_v53 = vmax.f32 %v4113_v0, 0.0  ;;  %v5035_v31 = vmax.f32 %v4116_v60, 0.0 }
 0x212   :  { %5023 = vst [vmem:[#allocation77_spill] sm:$0xff] %v4246_v48  ;;  %5024 = vst [vmem:[#allocation78_spill] sm:$0xff] %v4249_v38  ;;  %v4258_v35 = vpop.eup %2747  ;;  %v2053_v48 = vadd.f32 %v2052_v19, %v4061_v44  ;;  %v2064_v46 = vpop.f32.mrb[60].mxu1  ;;  %v2080_v13 = vmax.f32 %v2007_v27, 0.0  ;;  %v2096_v3 = vmax.f32 %v2055_v42, 0.0  ;;  %v5037_v11 = vmax.f32 %v4181_v58, 0.0 }
 0x213   :  { %5025 = vst [vmem:[#allocation79_spill] sm:$0xff] %v4252_v36  ;;  %5026 = vst [vmem:[#allocation80_spill] sm:$0xff] %v4255_v45  ;;  %v4269_v59 = vpop.eup %2749  ;;  %v4274_v17 = vpop.f32.mrb[63].mxu0  ;;  %v2103_v50 = vmax.f32 %v5035_v31, %v2079_v21  ;;  %v2059_v45 = vadd.f32 %v2058_v14, %v4061_v44  ;;  %v2081_v42 = vmax.f32 %v2011_v5, 0.0  ;;  %v5039_v14 = vmax.f32 %v4177_v4, 0.0 }
 0x214   :  { %5027 = vst [vmem:[#allocation81_spill] sm:$0xff] %v4258_v35  ;;  %5029 = vst [vmem:[#allocation82_spill] sm:$0xff] %v4264_v22  ;;  %v4902_v35 = vmax.f32 %v4252_v36, 0.0  ;;  %v4276_v61 = vpop.f32.mrb[61].mxu1  ;;  %v4278_v19 = vpop.eup %2751  ;;  %v2095_v7 = vmax.f32 %v2053_v48, 0.0  ;;  %v2104_v27 = vmax.f32 %v5037_v11, %v2080_v13  ;;  %v4301_v36 = vadd.f32 %v2016_v43, %v4061_v44 }
 0x215   :  { %5030 = vst [vmem:[#allocation83_spill] sm:$0xff] %v4269_v59  ;;  %5031 = vst [vmem:[#allocation84_spill] sm:$0xff] %v4278_v19  ;;  %v4281_v57 = vpop.eup %2753  ;;  %v4293_v19 = vadd.f32 %v2012_v54, %v4065_v16  ;;  %v2111_v31 = vmax.f32 %v2103_v50, %v5039_v14  ;;  %v2097_v54 = vmax.f32 %v2059_v45, 0.0  ;;  %v5042_v43 = vmax.f32 %v4185_v33, 0.0 }
 0x216   :  { %5032 = vst [vmem:[#allocation85_spill] sm:$0xff] %v4281_v57  ;;  %v4287_v59 = vmax.f32 %v5033_v53, %v4902_v35  ;;  %v4295_v48 = vpop.eup %2755  ;;  %v2061_v57 = vadd.f32 %v2060_v51, %v4065_v16  ;;  %v4303_v53 = vpop.f32.mrb[64].mxu0  ;;  %v2083_v30 = vmax.f32 %v4301_v36, 0.0  ;;  %v5049_v36 = vmax.f32 %v4219_v34, 0.0 }
 0x217   :  { %5036 = vst [vmem:[#allocation87_spill] sm:$0xff] %v4295_v48  ;;  %v4305_v35 = vpop.eup %2757  ;;  %v2082_v0 = vmax.f32 %v4293_v19, 0.0  ;;  %v4311_v48 = vadd.f32 %v2064_v46, %v4061_v44  ;;  %v4313_v11 = vpop.f32.mrb[65].mxu0  ;;  %v2112_v51 = vmax.f32 %v2104_v27, %v5042_v43  ;;  %v2119_v45 = vmax.f32 %v2111_v31, %v2095_v7 }
 0x218   :  { %5034 = vst [vmem:[#allocation86_spill] sm:$0xff] %v4287_v59  ;;  %5038 = vst [vmem:[#allocation88_spill] sm:$0xff] %v4305_v35  ;;  %v4315_v5 = vpop.eup %2759  ;;  %v5043_v59 = vmax.f32 %v4191_v62, 0.0  ;;  %v2098_v35 = vmax.f32 %v2061_v57, 0.0  ;;  %v5045_v19 = vmax.f32 %v4199_v9, 0.0  ;;  %v5048_v57 = vmax.f32 %v4195_v41, 0.0 }
 0x219   :  { %5040 = vst [vmem:[#allocation89_spill] sm:$0xff] %v4313_v11  ;;  %5041 = vst [vmem:[#allocation90_spill] sm:$0xff] %v4315_v5  ;;  %v4322_v50 = vpop.eup %2761  ;;  %v2099_v14 = vmax.f32 %v4311_v48, 0.0  ;;  %v5046_v11 = vmax.f32 %v3447_v25, 0.0  ;;  %v2120_v43 = vmax.f32 %v2112_v51, %v2096_v3  ;;  %v5050_v31 = vmax.f32 %v3449_v32, 0.0 }
 0x21a   :  { %v2105_v38 = vmax.f32 %v5043_v59, %v2081_v42  ;;  %5044 = vst [vmem:[#allocation91_spill] sm:$0xff] %v4322_v50  ;;  %v2106_v46 = vmax.f32 %v5045_v19, %v2082_v0  ;;  %v4332_v27 = vpop.eup %2763  ;;  %v2107_v50 = vmax.f32 %v5049_v36, %v2083_v30  ;;  %v5051_v48 = vmax.f32 %v4116_v60, 0.0 }
 0x21b   :  { %v4330_v5 = vmul.f32 %v4094_v24, %v5046_v11  ;;  %5047 = vst [vmem:[#allocation92_spill] sm:$0xff] %v4332_v27  ;;  %v4341_v19 = vmul.f32 %v4122_v55, %v5050_v31  ;;  %v2175_v22 = vsub.f32 %v2079_v21, %v2119_v45  ;;  %v5052_v11 = vmax.f32 %v4177_v4, 0.0 }
 0x21c   :  { %v2113_v59 = vmax.f32 %v2105_v38, %v5048_v57  ;;  %v2127_v25 = vsub.f32 %v5051_v48, %v2119_v45  ;;  %v2271_v27 = vsub.f32 %v2095_v7, %v2119_v45  ;;  %v5053_v51 = vmax.f32 %v4181_v58, 0.0 }
 0x21d   :  { %v2223_v23 = vsub.f32 %v5052_v11, %v2119_v45  ;;  %v2176_v38 = vsub.f32 %v2080_v13, %v2120_v43  ;;  %v5054_v57 = vmax.f32 %v4185_v33, 0.0  ;;  %v2272_v2 = vsub.f32 %v2096_v3, %v2120_v43 }
 0x21e   :  { %v2128_v10 = vsub.f32 %v5053_v51, %v2120_v43  ;;  %v2137_v32 = vmul.f32 1.442695, %v2127_v25  ;;  %v2185_v28 = vmul.f32 1.442695, %v2175_v22  ;;  %v2121_v52 = vmax.f32 %v2113_v59, %v2097_v54 }
 0x21f   :  { %v2224_v36 = vsub.f32 %v5054_v57, %v2120_v43  ;;  %v2233_v31 = vmul.f32 1.442695, %v2223_v23  ;;  %v2281_v15 = vmul.f32 1.442695, %v2271_v27  ;;  %v2187_v48 = vmul.f32 1.442695, %v2176_v38 }
 0x220   :  { %v2139_v60 = vmul.f32 1.442695, %v2128_v10  ;;  %v5055_v21 = vmax.f32 %v4215_v26, 0.0  ;;  %2765 = vpow2.f32 %v2137_v32  ;;  %v2283_v45 = vmul.f32 1.442695, %v2272_v2 }
 0x221   :  { %v2235_v7 = vmul.f32 1.442695, %v2224_v36  ;;  %v5056_v58 = vmax.f32 %v4191_v62, 0.0  ;;  %2767 = vpow2.f32 %v2185_v28  ;;  %v2177_v33 = vsub.f32 %v2081_v42, %v2121_v52 }
 0x222   :  { %v2114_v4 = vmax.f32 %v2106_v46, %v5055_v21  ;;  %v5057_v3 = vmax.f32 %v4195_v41, 0.0  ;;  %v2273_v22 = vsub.f32 %v2097_v54, %v2121_v52  ;;  %2769 = vpow2.f32 %v2233_v31 }
 0x223   :  { %v2129_v13 = vsub.f32 %v5056_v58, %v2121_v52  ;;  %v5058_v10 = vmax.f32 %v4223_v63, 0.0  ;;  %2771 = vpow2.f32 %v2281_v15  ;;  %v2189_v46 = vmul.f32 1.442695, %v2177_v33 }
 0x224   :  { %v2225_v43 = vsub.f32 %v5057_v3, %v2121_v52  ;;  %v2122_v27 = vmax.f32 %v2114_v4, %v2098_v35  ;;  %v2285_v11 = vmul.f32 1.442695, %v2273_v22  ;;  %2773 = vpow2.f32 %v2139_v60 }
 0x225   :  { %v2141_v23 = vmul.f32 1.442695, %v2129_v13  ;;  %v2115_v59 = vmax.f32 %v2107_v50, %v5058_v10  ;;  %v5059_v2 = vmax.f32 %v4199_v9, 0.0  ;;  %v5060_v42 = vmov %v5055_v21 }
 0x226   :  { %v2237_v25 = vmul.f32 1.442695, %v2225_v43  ;;  %v2178_v28 = vsub.f32 %v2082_v0, %v2122_v27  ;;  %v2226_v41 = vsub.f32 %v5060_v42, %v2122_v27  ;;  %2775 = vpow2.f32 %v2187_v48  ;;  %v5073_v42 = vld [vmem:[#allocation64_spill] sm:$0xff] }
 0x227   :  { %v2130_v62 = vsub.f32 %v5059_v2, %v2122_v27  ;;  %v2274_v52 = vsub.f32 %v2098_v35, %v2122_v27  ;;  %v2123_v54 = vmax.f32 %v2115_v59, %v2099_v14  ;;  %v1036_v51 = vadd.f32 %v4096_v37, %v4094_v24 }
 0x228   :  { %2777 = vpow2.f32 %v2235_v7  ;;  %v2191_v15 = vmul.f32 1.442695, %v2178_v28  ;;  %v2239_v38 = vmul.f32 1.442695, %v2226_v41  ;;  %v5061_v36 = vmax.f32 %v4219_v34, 0.0 }
 0x229   :  { %v2143_v50 = vmul.f32 1.442695, %v2130_v62  ;;  %2779 = vpow2.f32 %v2283_v45  ;;  %v2287_v57 = vmul.f32 1.442695, %v2274_v52  ;;  %v2179_v32 = vsub.f32 %v2083_v30, %v2123_v54  ;;  %v5074_v52 = vld [vmem:[#allocation61_spill] sm:$0xff] }
 0x22a   :  { %v2131_v9 = vsub.f32 %v5061_v36, %v2123_v54  ;;  %2781 = vpow2.f32 %v2141_v23  ;;  %v5062_v0 = vmov %v5058_v10  ;;  %v2275_v31 = vsub.f32 %v2099_v14, %v2123_v54  ;;  %v4374_v4 = vpop.eup %2765  ;;  %v5078_v36 = vld [vmem:[#allocation82_spill] sm:$0xff] }
 0x22b   :  { %v2227_v26 = vsub.f32 %v5062_v0, %v2123_v54  ;;  %v1037_v35 = vadd.f32 %v4134_v29, %v4122_v55  ;;  %2783 = vpow2.f32 %v2189_v46  ;;  %v2193_v60 = vmul.f32 1.442695, %v2179_v32  ;;  %v4379_v14 = vpop.eup %2767  ;;  %v5079_v32 = vld [vmem:[#allocation9_spill] sm:$0xff] }
 0x22c   :  { %v2145_v24 = vmul.f32 1.442695, %v2131_v9  ;;  %v5063_v48 = vmax.f32 %v3491_v40, 0.0  ;;  %2785 = vpow2.f32 %v2237_v25  ;;  %v2289_v30 = vmul.f32 1.442695, %v2275_v31  ;;  %v4384_v58 = vpop.eup %2769  ;;  %v5070_v25 = vld [vmem:[#allocation60_spill] sm:$0xff] }
 0x22d   :  { %v2241_v34 = vmul.f32 1.442695, %v2227_v26  ;;  %v5064_v7 = vmax.f32 %v3479_v12, 0.0  ;;  %2787 = vpow2.f32 %v2285_v11  ;;  %v1084_v45 = vadd.f32 %v4098_v18, %v1036_v51  ;;  %v4393_v3 = vpop.eup %2771 }
 0x22e   :  { %v1044_v21 = vmul.f32 %v4096_v37, %v5063_v48  ;;  %v1085_v40 = vadd.f32 %v4137_v1, %v1037_v35  ;;  %2789 = vpow2.f32 %v2143_v50  ;;  %v5065_v13 = vmax.f32 %v3558_v6, 0.0  ;;  %v5081_v35 = vld [vmem:[#allocation8_spill] sm:$0xff]  ;;  %v5083_v48 = vld [vmem:[#allocation62_spill] sm:$0xff] }
 0x22f   :  { %v1045_v63 = vmul.f32 %v4134_v29, %v5064_v7  ;;  %v5066_v29 = vmax.f32 %v3548_v49, 0.0  ;;  %2791 = vpow2.f32 %v2191_v15  ;;  %v5067_v22 = vmax.f32 %v3623_v39, 0.0  ;;  %v5076_v15 = vld [vmem:[#allocation72_spill] sm:$0xff] }
 0x230   :  { %v1052_v55 = vadd.f32 %v1044_v21, %v4330_v5  ;;  %v1092_v12 = vmul.f32 %v4098_v18, %v5065_v13  ;;  %v1132_v5 = vadd.f32 %v4107_v56, %v1084_v45  ;;  %v1133_v43 = vadd.f32 %v4139_v8, %v1085_v40  ;;  %v5087_v40 = vld [vmem:[#allocation78_spill] sm:$0xff] }
 0x231   :  { %v1053_v37 = vadd.f32 %v1045_v63, %v4341_v19  ;;  %v1093_v33 = vmul.f32 %v4137_v1, %v5066_v29  ;;  %v1140_v23 = vmul.f32 %v4107_v56, %v5067_v22  ;;  %v4400_v19 = vpop.eup %2773  ;;  %2793 = vpow2.f32 %v2239_v38  ;;  %v5085_v63 = vld [vmem:[#allocation73_spill] sm:$0xff] }
 0x232   :  { %v1100_v6 = vadd.f32 %v1092_v12, %v1052_v55  ;;  %v5068_v49 = vmax.f32 %v3612_v20, 0.0  ;;  %v4405_v27 = vpop.eup %2775  ;;  %2795 = vpow2.f32 %v2287_v57  ;;  %v2019_v10 = vadd.f32 %v4274_v17, %v4065_v16 }
 0x233   :  { %v1101_v18 = vadd.f32 %v1093_v33, %v1053_v37  ;;  %v2067_v39 = vadd.f32 %v4276_v61, %v4065_v16  ;;  %v2023_v56 = vadd.f32 %v4303_v53, %v4061_v44  ;;  %v4413_v59 = vpop.eup %2777  ;;  %2797 = vpow2.f32 %v2145_v24  ;;  %v5071_v44 = vld [vmem:[#allocation3_spill] sm:$0xff] }
 0x234   :  { %v1141_v1 = vmul.f32 %v4139_v8, %v5068_v49  ;;  %v4415_v46 = vadd.f32 %v1140_v23, %v1100_v6  ;;  %v5069_v8 = vmax.f32 %v3453_v47, 0.0  ;;  %v4422_v2 = vpop.eup %2779  ;;  %2799 = vpow2.f32 %v2193_v60  ;;  %v5075_v47 = vld [vmem:[#allocation65_spill] sm:$0xff]  ;;  %v5091_v6 = vld [vmem:[#allocation14_spill] sm:$0xff] }
 0x235   :  { %v2084_v17 = vmax.f32 %v2019_v10, 0.0  ;;  %v2100_v62 = vmax.f32 %v2067_v39, 0.0  ;;  %v2085_v61 = vmax.f32 %v2023_v56, 0.0  ;;  %v4424_v28 = vpop.eup %2781  ;;  %2801 = vpow2.f32 %v2241_v34  ;;  %v5084_v34 = vld [vmem:[#allocation66_spill] sm:$0xff] }
 0x236   :  { %v4417_v20 = vadd.f32 %v1141_v1, %v1101_v18  ;;  %v998_v11 = vmul.f32 %v5070_v25, %v5069_v8  ;;  %v5072_v53 = vmax.f32 %v5071_v44, 0.0  ;;  %v1038_v54 = vadd.f32 %v5074_v52, %v5070_v25  ;;  %v4433_v50 = vpop.eup %2783  ;;  %v5093_v1 = vld [vmem:[#allocation63_spill] sm:$0xff]  ;;  %v5094_v56 = vld [vmem:[#allocation58_spill] sm:$0xff] }
 0x237   :  { %v1039_v51 = vadd.f32 %v5075_v47, %v5073_v42  ;;  %2803 = vpow2.f32 %v2289_v30  ;;  %v5077_v38 = vmax.f32 %v5076_v15, 0.0  ;;  %v2109_v9 = vmax.f32 %v5078_v36, %v2085_v61  ;;  %v4441_v31 = vpop.eup %2785 }
 0x238   :  { %v999_v41 = vmul.f32 %v5073_v42, %v5072_v53  ;;  %v5080_v0 = vmax.f32 %v5079_v32, 0.0  ;;  %2805 = vrcp.f32 %v1132_v5  ;;  %v5082_v24 = vmax.f32 %v5081_v35, 0.0  ;;  %v4448_v7 = vpop.eup %2787  ;;  %v5089_v5 = vld [vmem:[#allocation15_spill] sm:$0xff] }
 0x239   :  { %v2108_v57 = vmax.f32 %v5077_v38, %v2084_v17  ;;  %v1086_v21 = vadd.f32 %v5083_v48, %v1038_v54  ;;  %v1087_v30 = vadd.f32 %v5084_v34, %v1039_v51  ;;  %2807 = vrcp.f32 %v1133_v43  ;;  %v4454_v29 = vpop.eup %2789  ;;  %v5099_v38 = vld [vmem:[#allocation67_spill] sm:$0xff] }
 0x23a   :  { %v1046_v26 = vmul.f32 %v5074_v52, %v5080_v0  ;;  %v1047_v60 = vmul.f32 %v5075_v47, %v5082_v24  ;;  %v5086_v55 = vmax.f32 %v5085_v63, 0.0  ;;  %v5088_v37 = vmax.f32 %v5087_v40, 0.0  ;;  %v4463_v10 = vpop.eup %2791 }
 0x23b   :  { %v5090_v22 = vmax.f32 %v5089_v5, 0.0  ;;  %v5092_v18 = vmax.f32 %v5091_v6, 0.0  ;;  %v1134_v43 = vadd.f32 %v5093_v1, %v1086_v21  ;;  %v5095_v8 = vmax.f32 %v5094_v56, 0.0  ;;  %v5106_v6 = vld [vmem:[#allocation89_spill] sm:$0xff] }
 0x23c   :  { %v2116_v45 = vmax.f32 %v2108_v57, %v5086_v55  ;;  %v2117_v13 = vmax.f32 %v2109_v9, %v5088_v37  ;;  %v1054_v12 = vadd.f32 %v1046_v26, %v998_v11  ;;  %v1055_v33 = vadd.f32 %v1047_v60, %v999_v41  ;;  %v5096_v11 = vld [vmem:[#allocation74_spill] sm:$0xff]  ;;  %v4469_v41 = vpop.eup %2793 }
 0x23d   :  { %v1094_v23 = vmul.f32 %v5083_v48, %v5090_v22  ;;  %v1095_v49 = vmul.f32 %v5084_v34, %v5092_v18  ;;  %v5097_v44 = vmax.f32 %v5096_v11, 0.0  ;;  %v5098_v52 = vmov %v5088_v37  ;;  %v4474_v36 = vpop.eup %2795  ;;  %v5102_v34 = vld [vmem:[#allocation21_spill] sm:$0xff] }
 0x23e   :  { %v2124_v39 = vmax.f32 %v2116_v45, %v2100_v62  ;;  %v2125_v25 = vsub.f32 %v5095_v8, %v2117_v13  ;;  %v2221_v42 = vsub.f32 %v2085_v61, %v2117_v13  ;;  %v2269_v54 = vsub.f32 %v5098_v52, %v2117_v13  ;;  %v4480_v61 = vpop.eup %2797 }
 0x23f   :  { %v2173_v53 = vsub.f32 %v5097_v44, %v2117_v13  ;;  %v1102_v47 = vadd.f32 %v1094_v23, %v1054_v12  ;;  %v1103_v51 = vadd.f32 %v1095_v49, %v1055_v33  ;;  %v1135_v57 = vadd.f32 %v5099_v38, %v1087_v30  ;;  %v4485_v30 = vpop.eup %2799  ;;  %v5104_v13 = vld [vmem:[#allocation20_spill] sm:$0xff]  ;;  %v5112_v44 = vld [vmem:[#allocation75_spill] sm:$0xff] }
 0x240   :  { %v5100_v9 = vmax.f32 %v5076_v15, 0.0  ;;  %v2180_v0 = vsub.f32 %v2084_v17, %v2124_v39  ;;  %v5101_v26 = vmov %v5086_v55  ;;  %v2276_v24 = vsub.f32 %v2100_v62, %v2124_v39  ;;  %v4490_v12 = vpop.eup %2801  ;;  %v5107_v49 = vld [vmem:[#allocation4_spill] sm:$0xff] }
 0x241   :  { %v2228_v35 = vsub.f32 %v5101_v26, %v2124_v39  ;;  %v2133_v60 = vmul.f32 1.442695, %v2125_v25  ;;  %v2181_v48 = vmul.f32 1.442695, %v2173_v53  ;;  %v2229_v21 = vmul.f32 1.442695, %v2221_v42  ;;  %v4494_v22 = vpop.eup %2803 }
 0x242   :  { %v2132_v32 = vsub.f32 %v5100_v9, %v2124_v39  ;;  %v5103_v55 = vmax.f32 %v5102_v34, 0.0  ;;  %v2195_v37 = vmul.f32 1.442695, %v2180_v0  ;;  %v5105_v17 = vmax.f32 %v5104_v13, 0.0  ;;  %v5109_v39 = vld [vmem:[#allocation68_spill] sm:$0xff]  ;;  %v2806_v8 = vpop.eup %2805  ;;  %v5110_v25 = vld [vmem:[#allocation5_spill] sm:$0xff] }
 0x243   :  { %v2243_v15 = vmul.f32 1.442695, %v2228_v35  ;;  %v2291_v62 = vmul.f32 1.442695, %v2276_v24  ;;  %2809 = vpow2.f32 %v2133_v60  ;;  %v2277_v33 = vmul.f32 1.442695, %v2269_v54 }
 0x244   :  { %v1142_v45 = vmul.f32 %v5093_v1, %v5103_v55  ;;  %v2147_v40 = vmul.f32 1.442695, %v2132_v32  ;;  %v1143_v63 = vmul.f32 %v5099_v38, %v5105_v17  ;;  %v2025_v18 = vadd.f32 %v5106_v6, %v4065_v16  ;;  %v5113_v42 = vld [vmem:[#allocation69_spill] sm:$0xff]  ;;  %v5114_v54 = vld [vmem:[#allocation76_spill] sm:$0xff]  ;;  %v5115_v9 = vld [vmem:[#allocation11_spill] sm:$0xff] }
 0x245   :  { %v5108_v1 = vmax.f32 %v5107_v49, 0.0  ;;  %v5111_v11 = vmax.f32 %v5110_v25, 0.0  ;;  %v1040_v52 = vadd.f32 %v5113_v42, %v5109_v39  ;;  %v1157_v38 = vmul.f32 %v2806_v8, %v4415_v46  ;;  %v5117_v35 = vld [vmem:[#allocation10_spill] sm:$0xff]  ;;  %v5121_v46 = vld [vmem:[#allocation77_spill] sm:$0xff]  ;;  %v5128_v8 = vld [vmem:[#allocation71_spill] sm:$0xff] }
 0x246   :  { %v4492_v5 = vadd.f32 %v1142_v45, %v1102_v47  ;;  %2811 = vpow2.f32 %v2147_v40  ;;  %v4496_v23 = vadd.f32 %v1143_v63, %v1103_v51  ;;  %v1041_v47 = vadd.f32 %v5114_v54, %v5112_v44  ;;  %v2808_v51 = vpop.eup %2807  ;;  %v5119_v34 = vld [vmem:[#allocation70_spill] sm:$0xff]  ;;  %v5122_v63 = vld [vmem:[#allocation17_spill] sm:$0xff] }
 0x247   :  { %v1000_v56 = vmul.f32 %v5109_v39, %v5108_v1  ;;  %2813 = vpow2.f32 %v2195_v37  ;;  %v1001_v53 = vmul.f32 %v5112_v44, %v5111_v11  ;;  %v2086_v16 = vmax.f32 %v2025_v18, 0.0  ;;  %v5120_v45 = vld [vmem:[#allocation86_spill] sm:$0xff]  ;;  %v5126_v1 = vld [vmem:[#allocation16_spill] sm:$0xff]  ;;  %v5129_v11 = vld [vmem:[#allocation81_spill] sm:$0xff] }
 0x248   :  { %2815 = vpow2.f32 %v2243_v15  ;;  %v5116_v32 = vmax.f32 %v5115_v9, 0.0  ;;  %v1159_v26 = vmul.f32 %v2808_v51, %v4417_v20  ;;  %v5118_v24 = vmax.f32 %v5117_v35, 0.0  ;;  %v5130_v44 = vld [vmem:[#allocation23_spill] sm:$0xff]  ;;  %v5137_v35 = vld [vmem:[#allocation22_spill] sm:$0xff] }
 0x249   :  { %2817 = vpow2.f32 %v2291_v62  ;;  %v1088_v55 = vadd.f32 %v5119_v34, %v1040_v52  ;;  %v2110_v40 = vmax.f32 %v5120_v45, %v2086_v16  ;;  %v1089_v15 = vadd.f32 %v5121_v46, %v1041_v47  ;;  %v5124_v62 = vld [vmem:[#allocation80_spill] sm:$0xff]  ;;  %v5134_v47 = vld [vmem:[#allocation79_spill] sm:$0xff] }
 0x24a   :  { %v1048_v0 = vmul.f32 %v5113_v42, %v5116_v32  ;;  %v1049_v60 = vmul.f32 %v5114_v54, %v5118_v24  ;;  %2819 = vpow2.f32 %v2181_v48  ;;  %v1172_v13 = vadd.f32 %v1159_v26, %v1157_v38 }
 0x24b   :  { %2821 = vpow2.f32 %v2229_v21  ;;  %v5123_v6 = vmax.f32 %v5122_v63, 0.0  ;;  %v5125_v18 = vmax.f32 %v5124_v62, 0.0  ;;  %v5127_v39 = vmax.f32 %v5126_v1, 0.0  ;;  %v5141_v63 = vld [vmem:[#allocation83_spill] sm:$0xff]  ;;  %v5145_v1 = vld [vmem:[#allocation84_spill] sm:$0xff] }
 0x24c   :  { %v1056_v37 = vadd.f32 %v1048_v0, %v1000_v56  ;;  %v1057_v17 = vadd.f32 %v1049_v60, %v1001_v53  ;;  %2823 = vpow2.f32 %v2277_v33  ;;  %v1136_v25 = vadd.f32 %v5128_v8, %v1088_v55  ;;  %1173 = vadd.xlane.f32.xlu0 %v1172_v13  ;;  %v5132_v33 = vld [vmem:[#allocation59_spill] sm:$0xff] }
 0x24d   :  { %v1096_v20 = vmul.f32 %v5119_v34, %v5123_v6  ;;  %v2118_v49 = vmax.f32 %v2110_v40, %v5125_v18  ;;  %v1097_v48 = vmul.f32 %v5121_v46, %v5127_v39  ;;  %2825 = vrcp.f32 %v1134_v43  ;;  %v4538_v32 = vpop.eup %2809 }
 0x24e   :  { %v1137_v21 = vadd.f32 %v5129_v11, %v1089_v15  ;;  %v5131_v53 = vmax.f32 %v5130_v44, 0.0  ;;  %2827 = vrcp.f32 %v1135_v57  ;;  %v5133_v52 = vmax.f32 %v5132_v33, 0.0  ;;  %v5139_v15 = vld [vmem:[#allocation6_spill] sm:$0xff]  ;;  %v5149_v44 = vld [vmem:[#allocation12_spill] sm:$0xff]  ;;  %v5151_v33 = vld [vmem:[#allocation19_spill] sm:$0xff] }
 0x24f   :  { %v1104_v56 = vadd.f32 %v1096_v20, %v1056_v37  ;;  %v5135_v51 = vmax.f32 %v5134_v47, 0.0  ;;  %v2222_v9 = vsub.f32 %v2086_v16, %v2118_v49  ;;  %v5136_v0 = vmov %v5125_v18  ;;  %v5142_v20 = vld [vmem:[#allocation7_spill] sm:$0xff]  ;;  %v5144_v18 = vld [vmem:[#allocation88_spill] sm:$0xff] }
 0x250   :  { %v1144_v42 = vmul.f32 %v5128_v8, %v5131_v53  ;;  %v2126_v54 = vsub.f32 %v5133_v52, %v2118_v49  ;;  %v2270_v43 = vsub.f32 %v5136_v0, %v2118_v49  ;;  %v1105_v26 = vadd.f32 %v1097_v48, %v1057_v17  ;;  %v4545_v55 = vpop.eup %2811  ;;  %v5146_v48 = vld [vmem:[#allocation90_spill] sm:$0xff] }
 0x251   :  { %v2174_v38 = vsub.f32 %v5135_v51, %v2118_v49  ;;  %v5138_v24 = vmax.f32 %v5137_v35, 0.0  ;;  %v2231_v40 = vmul.f32 1.442695, %v2222_v9  ;;  %2829 = vrcp.f32 %v1136_v25  ;;  %v4547_v37 = vpop.eup %2813  ;;  %v5154_v9 = vld [vmem:[#allocation91_spill] sm:$0xff] }
 0x252   :  { %v1152_v34 = vadd.f32 %v1144_v42, %v1104_v56  ;;  %v2135_v57 = vmul.f32 1.442695, %v2126_v54  ;;  %v2279_v16 = vmul.f32 1.442695, %v2270_v43  ;;  %2831 = vrcp.f32 %v1137_v21  ;;  %v4552_v6 = vpop.eup %2815  ;;  %v5147_v56 = vld [vmem:[#allocation13_spill] sm:$0xff]  ;;  %v5155_v43 = vld [vmem:[#allocation18_spill] sm:$0xff] }
 0x253   :  { %v1145_v60 = vmul.f32 %v5129_v11, %v5138_v24  ;;  %v2183_v45 = vmul.f32 1.442695, %v2174_v38  ;;  %v5140_v13 = vmax.f32 %v5139_v15, 0.0  ;;  %v5143_v62 = vmax.f32 %v5142_v20, 0.0  ;;  %v4561_v25 = vpop.eup %2817  ;;  %v5153_v54 = vld [vmem:[#allocation85_spill] sm:$0xff] }
 0x254   :  { %2833 = vpow2.f32 %v2135_v57  ;;  %v1042_v39 = vadd.f32 %v5145_v1, %v5141_v63  ;;  %v1043_v8 = vadd.f32 %v5146_v48, %v5144_v18  ;;  %v5148_v11 = vmax.f32 %v5147_v56, 0.0  ;;  %v4572_v51 = vpop.eup %2819 }
 0x255   :  { %v1153_v46 = vadd.f32 %v1145_v60, %v1105_v26  ;;  %v1002_v17 = vmul.f32 %v5141_v63, %v5140_v13  ;;  %v1003_v49 = vmul.f32 %v5144_v18, %v5143_v62  ;;  %2835 = vpow2.f32 %v2183_v45  ;;  %v4579_v24 = vpop.eup %2821  ;;  %v5157_v13 = vld [vmem:[#allocation87_spill] sm:$0xff]  ;;  %v5158_v63 = vld [vmem:[#allocation92_spill] sm:$0xff]  ;;  %v5159_v62 = vld [vmem:[#allocation25_spill] sm:$0xff] }
 0x256   :  { %v1050_v21 = vmul.f32 %v5145_v1, %v5148_v11  ;;  %v5150_v53 = vmax.f32 %v5149_v44, 0.0  ;;  %v5152_v52 = vmax.f32 %v5151_v33, 0.0  ;;  %2837 = vpow2.f32 %v2231_v40  ;;  %v4583_v15 = vpop.eup %2823  ;;  %v5165_v33 = vld [vmem:[#allocation28_spill] sm:$0xff] }
 0x257   :  { %v1090_v38 = vadd.f32 %v5153_v54, %v1042_v39  ;;  %v1091_v0 = vadd.f32 %v5154_v9, %v1043_v8  ;;  %v5156_v26 = vmax.f32 %v5155_v43, 0.0  ;;  %v2197_v60 = vadd.f32 %v4572_v51, %v4538_v32  ;;  %v5161_v39 = vld [vmem:[#allocation24_spill] sm:$0xff]  ;;  %v2826_v56 = vpop.eup %2825 }
 0x258   :  { %v1051_v42 = vmul.f32 %v5146_v48, %v5150_v53  ;;  %v1098_v47 = vmul.f32 %v5153_v54, %v5152_v52  ;;  %2839 = vpow2.f32 %v2279_v16  ;;  %v1058_v57 = vadd.f32 %v1050_v21, %v1002_v17  ;;  %v2828_v53 = vpop.eup %2827 }
 0x259   :  { %v1099_v35 = vmul.f32 %v5154_v9, %v5156_v26  ;;  %v1138_v40 = vadd.f32 %v5157_v13, %v1090_v38  ;;  %v1139_v20 = vadd.f32 %v5158_v63, %v1091_v0  ;;  %v5160_v18 = vmax.f32 %v5159_v62, 0.0  ;;  %v5171_v62 = vld [vmem:[#allocation30_spill] sm:$0xff] }
 0x25a   :  { %v1059_v45 = vadd.f32 %v1051_v42, %v1003_v49  ;;  %v5162_v48 = vmax.f32 %v5161_v39, 0.0  ;;  %v4594_v11 = vadd.f32 %v4579_v24, %v2197_v60  ;;  %v1106_v16 = vadd.f32 %v1098_v47, %v1058_v57  ;;  %v5163_v49 = vld [vmem:[#allocation29_spill] sm:$0xff]  ;;  %v5169_v57 = vld [vmem:[#allocation43_spill] sm:$0xff] }
 0x25b   :  { %v1146_v1 = vmul.f32 %v5157_v13, %v5160_v18  ;;  %v5164_v21 = vmax.f32 %v5163_v49, 0.0  ;;  %v1161_v42 = vmul.f32 %v2826_v56, %v4492_v5  ;;  %2841 = vrcp.f32 %v1138_v40  ;;  %v2830_v43 = vpop.eup %2829  ;;  %v5175_v49 = vld [vmem:[#allocation46_spill] sm:$0xff] }
 0x25c   :  { %v1147_v8 = vmul.f32 %v5158_v63, %v5162_v48  ;;  %v1107_v17 = vadd.f32 %v1099_v35, %v1059_v45  ;;  %v5166_v52 = vmax.f32 %v5165_v33, 0.0  ;;  %v2199_v38 = vadd.f32 %v4379_v14, %v4374_v4  ;;  %v5167_v35 = vld [vmem:[#allocation45_spill] sm:$0xff] }
 0x25d   :  { %v2159_v44 = vmul.f32 %v4374_v4, %v5164_v21  ;;  %v1163_v9 = vmul.f32 %v2828_v53, %v4496_v23  ;;  %v1154_v0 = vadd.f32 %v1146_v1, %v1106_v16  ;;  %2843 = vrcp.f32 %v1139_v20  ;;  %v2832_v4 = vpop.eup %2831  ;;  %v5173_v1 = vld [vmem:[#allocation32_spill] sm:$0xff]  ;;  %v5179_v33 = vld [vmem:[#allocation33_spill] sm:$0xff] }
 0x25e   :  { %v2160_v54 = vmul.f32 %v4400_v19, %v5166_v52  ;;  %v1155_v47 = vadd.f32 %v1147_v8, %v1107_v17  ;;  %v2200_v26 = vadd.f32 %v4405_v27, %v4400_v19  ;;  %v5168_v60 = vmax.f32 %v5167_v35, 0.0  ;;  %v2834_v48 = vpop.eup %2833  ;;  %v5177_v53 = vld [vmem:[#allocation48_spill] sm:$0xff]  ;;  %v5181_v35 = vld [vmem:[#allocation31_spill] sm:$0xff] }
 0x25f   :  { %v5170_v45 = vmax.f32 %v5169_v57, 0.0  ;;  %v2247_v40 = vadd.f32 %v4384_v58, %v2199_v38  ;;  %v1175_v63 = vadd.f32 %v1163_v9, %v1161_v42  ;;  %v1165_v23 = vmul.f32 %v2830_v43, %v1152_v34 }
 0x260   :  { %v2207_v5 = vmul.f32 %v4379_v14, %v5168_v60  ;;  %v5172_v18 = vmax.f32 %v5171_v62, 0.0  ;;  %v5174_v39 = vmax.f32 %v5173_v1, 0.0  ;;  %v1167_v8 = vmul.f32 %v2832_v4, %v1153_v46  ;;  %v5183_v4 = vld [vmem:[#allocation49_spill] sm:$0xff] }
 0x261   :  { %v2208_v13 = vmul.f32 %v4405_v27, %v5170_v45  ;;  %v2248_v16 = vadd.f32 %v4413_v59, %v2200_v26  ;;  %v2836_v27 = vpop.eup %2835  ;;  %1176 = vadd.xlane.f32.xlu1 %v1175_v63  ;;  %v2295_v17 = vadd.f32 %v4393_v3, %v2247_v40  ;;  %v5176_v34 = vmax.f32 %v5175_v49, 0.0 }
 0x262   :  { %v2255_v20 = vmul.f32 %v4384_v58, %v5172_v18  ;;  %v2256_v19 = vmul.f32 %v4413_v59, %v5174_v39  ;;  %v2215_v14 = vadd.f32 %v2207_v5, %v2159_v44  ;;  %v5178_v58 = vmax.f32 %v5177_v53, 0.0  ;;  %v2838_v44 = vpop.eup %2837  ;;  %v5187_v39 = vld [vmem:[#allocation34_spill] sm:$0xff] }
 0x263   :  { %v2216_v56 = vadd.f32 %v2208_v13, %v2160_v54  ;;  %v2303_v21 = vmul.f32 %v4393_v3, %v5176_v34  ;;  %v5180_v52 = vmax.f32 %v5179_v33, 0.0  ;;  %v2198_v54 = vadd.f32 %v2836_v27, %v2834_v48  ;;  %v2840_v43 = vpop.eup %2839  ;;  %v5193_v33 = vld [vmem:[#allocation52_spill] sm:$0xff] }
 0x264   :  { %v2304_v42 = vmul.f32 %v4422_v2, %v5178_v58  ;;  %v1178_v38 = vadd.f32 %v1167_v8, %v1165_v23  ;;  %v2263_v59 = vadd.f32 %v2255_v20, %v2215_v14  ;;  %v2296_v26 = vadd.f32 %v4422_v2, %v2248_v16  ;;  %v5185_v23 = vld [vmem:[#allocation47_spill] sm:$0xff]  ;;  %v5191_v16 = vld [vmem:[#allocation50_spill] sm:$0xff] }
 0x265   :  { %v2161_v46 = vmul.f32 %v4424_v28, %v5180_v52  ;;  %v2264_v9 = vadd.f32 %v2256_v19, %v2216_v56  ;;  %2845 = vrcp.f32 %v2295_v17  ;;  %v5182_v60 = vmax.f32 %v5181_v35, 0.0  ;;  %v2842_v1 = vpop.eup %2841 }
 0x266   :  { %v2201_v5 = vadd.f32 %v4433_v50, %v4424_v28  ;;  %v2246_v57 = vadd.f32 %v2838_v44, %v2198_v54  ;;  %v2311_v45 = vadd.f32 %v2303_v21, %v2263_v59  ;;  %v2202_v40 = vadd.f32 %v4463_v10, %v4454_v29  ;;  %1179 = vadd.xlane.f32.xlu1 %v1178_v38  ;;  %v5195_v54 = vld [vmem:[#allocation27_spill] sm:$0xff] }
 0x267   :  { %v2162_v3 = vmul.f32 %v4454_v29, %v5182_v60  ;;  %v2312_v13 = vadd.f32 %v2304_v42, %v2264_v9  ;;  %2847 = vrcp.f32 %v2296_v26  ;;  %v5184_v63 = vmax.f32 %v5183_v4, 0.0  ;;  %v5189_v29 = vld [vmem:[#allocation36_spill] sm:$0xff]  ;;  %v2844_v49 = vpop.eup %2843  ;;  %v5197_v26 = vld [vmem:[#allocation26_spill] sm:$0xff] }
 0x268   :  { %v5186_v62 = vmax.f32 %v5185_v23, 0.0  ;;  %v2249_v20 = vadd.f32 %v4441_v31, %v2201_v5  ;;  %v2250_v28 = vadd.f32 %v4469_v41, %v2202_v40  ;;  %v5188_v19 = vmax.f32 %v5187_v39, 0.0  ;;  %v5205_v23 = vld [vmem:[#allocation55_spill] sm:$0xff]  ;;  %v5207_v39 = vld [vmem:[#allocation42_spill] sm:$0xff] }
 0x269   :  { %v2209_v2 = vmul.f32 %v4433_v50, %v5184_v63  ;;  %v5190_v14 = vmax.f32 %v5189_v29, 0.0  ;;  %v5192_v17 = vmax.f32 %v5191_v16, 0.0  ;;  %v1169_v34 = vmul.f32 %v2842_v1, %v1154_v0  ;;  %v5203_v63 = vld [vmem:[#allocation57_spill] sm:$0xff] }
 0x26a   :  { %v2210_v18 = vmul.f32 %v4463_v10, %v5186_v62  ;;  %v2257_v8 = vmul.f32 %v4441_v31, %v5188_v19  ;;  %v2297_v53 = vadd.f32 %v4448_v7, %v2249_v20  ;;  %v1171_v58 = vmul.f32 %v2844_v49, %v1155_v47 }
 0x26b   :  { %v2258_v56 = vmul.f32 %v4469_v41, %v5190_v14  ;;  %v2305_v50 = vmul.f32 %v4448_v7, %v5192_v17  ;;  %v2217_v10 = vadd.f32 %v2209_v2, %v2161_v46  ;;  %v2298_v42 = vadd.f32 %v4474_v36, %v2250_v28  ;;  %v5199_v7 = vld [vmem:[#allocation41_spill] sm:$0xff] }
 0x26c   :  { %v2218_v21 = vadd.f32 %v2210_v18, %v2162_v3  ;;  %v5194_v52 = vmax.f32 %v5193_v33, 0.0  ;;  %v5196_v38 = vmax.f32 %v5195_v54, 0.0  ;;  %2849 = vrcp.f32 %v2297_v53  ;;  %v5201_v3 = vld [vmem:[#allocation39_spill] sm:$0xff] }
 0x26d   :  { %v2265_v59 = vadd.f32 %v2257_v8, %v2217_v10  ;;  %v5198_v0 = vmax.f32 %v5197_v26, 0.0  ;;  %v1181_v35 = vadd.f32 %v1171_v58, %v1169_v34  ;;  %2851 = vrcp.f32 %v2298_v42  ;;  %v5209_v8 = vld [vmem:[#allocation44_spill] sm:$0xff]  ;;  %v5215_v10 = vld [vmem:[#allocation53_spill] sm:$0xff] }
 0x26e   :  { %v2306_v31 = vmul.f32 %v4474_v36, %v5194_v52  ;;  %v2157_v41 = vmul.f32 %v4538_v32, %v5196_v38  ;;  %v2266_v9 = vadd.f32 %v2258_v56, %v2218_v21  ;;  %v5200_v47 = vmax.f32 %v5199_v7, 0.0  ;;  %v5211_v56 = vld [vmem:[#allocation37_spill] sm:$0xff]  ;;  %v5217_v52 = vld [vmem:[#allocation51_spill] sm:$0xff] }
 0x26f   :  { %v2158_v46 = vmul.f32 %v2834_v48, %v5198_v0  ;;  %v5202_v5 = vmax.f32 %v5201_v3, 0.0  ;;  %v2313_v36 = vadd.f32 %v2305_v50, %v2265_v59  ;;  %v5204_v2 = vmax.f32 %v5203_v63, 0.0  ;;  %1182 = vadd.xlane.f32.xlu0 %v1181_v35  ;;  %v5221_v0 = vld [vmem:[#allocation40_spill] sm:$0xff] }
 0x270   :  { %v2205_v60 = vmul.f32 %v4572_v51, %v5200_v47  ;;  %v2314_v4 = vadd.f32 %v2306_v31, %v2266_v9  ;;  %v5206_v62 = vmax.f32 %v5205_v23, 0.0  ;;  %v2293_v1 = vadd.f32 %v4583_v15, %v4594_v11  ;;  %v2846_v51 = vpop.eup %2845  ;;  %v5223_v47 = vld [vmem:[#allocation54_spill] sm:$0xff]  ;;  %v5225_v63 = vld [vmem:[#allocation56_spill] sm:$0xff] }
 0x271   :  { %v2206_v40 = vmul.f32 %v2836_v27, %v5202_v5  ;;  %v2253_v32 = vmul.f32 %v4579_v24, %v5204_v2  ;;  %v2294_v28 = vadd.f32 %v2840_v43, %v2246_v57  ;;  %v5208_v19 = vmax.f32 %v5207_v39, 0.0  ;;  %v2848_v57 = vpop.eup %2847 }
 0x272   :  { %v2254_v18 = vmul.f32 %v2838_v44, %v5206_v62  ;;  %v2213_v48 = vadd.f32 %v2205_v60, %v2157_v41  ;;  %v5210_v29 = vmax.f32 %v5209_v8, 0.0  ;;  %v5212_v24 = vmax.f32 %v5211_v56, 0.0  ;;  %v5213_v44 = vld [vmem:[#allocation35_spill] sm:$0xff] }
 0x273   :  { %v2214_v20 = vadd.f32 %v2206_v40, %v2158_v46  ;;  %v2301_v27 = vmul.f32 %v4583_v15, %v5208_v19  ;;  %v5214_v17 = vmax.f32 %v5213_v44, 0.0  ;;  %v2322_v49 = vmul.f32 %v2846_v51, %v2311_v45 }
 0x274   :  { %v2302_v14 = vmul.f32 %v2840_v43, %v5210_v29  ;;  %v2163_v16 = vmul.f32 %v4480_v61, %v5212_v24  ;;  %v2261_v34 = vadd.f32 %v2253_v32, %v2213_v48  ;;  %2853 = vrcp.f32 %v2293_v1 }
 0x275   :  { %v2164_v50 = vmul.f32 %v4545_v55, %v5214_v17  ;;  %v2262_v11 = vadd.f32 %v2254_v18, %v2214_v20  ;;  %2855 = vrcp.f32 %v2294_v28  ;;  %v2203_v15 = vadd.f32 %v4485_v30, %v4480_v61  ;;  %v5219_v61 = vld [vmem:[#allocation38_spill] sm:$0xff] }
 0x276   :  { %v2204_v43 = vadd.f32 %v4547_v37, %v4545_v55  ;;  %v5216_v21 = vmax.f32 %v5215_v10, 0.0  ;;  %v2324_v58 = vmul.f32 %v2848_v57, %v2312_v13  ;;  %v2309_v42 = vadd.f32 %v2301_v27, %v2261_v34  ;;  %v2850_v46 = vpop.eup %2849 }
 0x277   :  { %v2310_v33 = vadd.f32 %v2302_v14, %v2262_v11  ;;  %v5218_v45 = vmax.f32 %v5217_v52, 0.0  ;;  %v2251_v38 = vadd.f32 %v4490_v12, %v2203_v15  ;;  %v5220_v59 = vmax.f32 %v5219_v61, 0.0  ;;  %v2852_v5 = vpop.eup %2851 }
 0x278   :  { %v2211_v53 = vmul.f32 %v4485_v30, %v5216_v21  ;;  %v2252_v41 = vadd.f32 %v4552_v6, %v2204_v43  ;;  %v2336_v9 = vadd.f32 %v2324_v58, %v2322_v49  ;;  %v5222_v30 = vmax.f32 %v5221_v0, 0.0  ;;  %v2356_v58 = vld [vmem:[%s4742_s6 + $0x8] sm:$0x3] }
 0x279   :  { %v2212_v31 = vmul.f32 %v4547_v37, %v5218_v45  ;;  %v2259_v55 = vmul.f32 %v4490_v12, %v5220_v59  ;;  %v2299_v7 = vadd.f32 %v4494_v22, %v2251_v38  ;;  %v5224_v60 = vmax.f32 %v5223_v47, 0.0 }
 0x27a   :  { %v2219_v54 = vadd.f32 %v2211_v53, %v2163_v16  ;;  %v2260_v13 = vmul.f32 %v4552_v6, %v5222_v30  ;;  %v2300_v37 = vadd.f32 %v4561_v25, %v2252_v41  ;;  %2337 = vadd.xlane.f32.xlu0 %v2336_v9  ;;  %v2326_v40 = vmul.f32 %v2850_v46, %v2313_v36  ;;  %v2354_v53 = vld [vmem:[%s4741_s5 + $0x8] sm:$0x3] }
 0x27b   :  { %v2220_v26 = vadd.f32 %v2212_v31, %v2164_v50  ;;  %v2307_v3 = vmul.f32 %v4494_v22, %v5224_v60  ;;  %v5226_v2 = vmax.f32 %v5225_v63, 0.0  ;;  %v2328_v23 = vmul.f32 %v2852_v5, %v2314_v4 }
 0x27c   :  { %v2267_v35 = vadd.f32 %v2259_v55, %v2219_v54  ;;  %2857 = vrcp.f32 %v2299_v7 }
 0x27d   :  { %v2268_v12 = vadd.f32 %v2260_v13, %v2220_v26  ;;  %v2308_v32 = vmul.f32 %v4561_v25, %v5226_v2  ;;  %2859 = vrcp.f32 %v2300_v37  ;;  %v2339_v18 = vadd.f32 %v2328_v23, %v2326_v40  ;;  %v2353_v25 = vld [vmem:[%s4741_s5] sm:$0xff] }
 0x27e   :  { %v2315_v6 = vadd.f32 %v2307_v3, %v2267_v35  ;;  %v2854_v48 = vpop.eup %2853  ;;  %2518 = vmatprep.mubr.msk.f32.mxu1 %vm2357_vm2, %v2353_v25 }
 0x27f   :  { %v2316_v62 = vadd.f32 %v2308_v32, %v2268_v12  ;;  %v2856_v20 = vpop.eup %2855  ;;  %2340 = vadd.xlane.f32.xlu1 %v2339_v18  ;;  %v2318_v1 = vmul.f32 %v2854_v48, %v2309_v42  ;;  %v2355_v42 = vld [vmem:[%s4742_s6] sm:$0xff] }
 0x280   :  { %v2320_v28 = vmul.f32 %v2856_v20, %v2310_v33 }
 0x282   :  { %v2333_v22 = vadd.f32 %v2320_v28, %v2318_v1 }
 0x284   :  { %2334 = vadd.xlane.f32.xlu0 %v2333_v22 }
 0x286   :  { %v2858_v51 = vpop.eup %2857 }
 0x287   :  { %v2860_v36 = vpop.eup %2859  ;;  %v2330_v39 = vmul.f32 %v2858_v51, %v2315_v6 }
 0x288   :  { %v2332_v19 = vmul.f32 %v2860_v36, %v2316_v62 }
 0x28a   :  { %v2342_v27 = vadd.f32 %v2332_v19, %v2330_v39 }
 0x28c   :  { %2343 = vadd.xlane.f32.xlu0 %v2342_v27 }
 0x2d9   :  { %v1174_v4 = vpop.xlane.xlu0 %1173 }
 0x2ee   :  { %v1177_v29 = vpop.xlane.xlu1 %1176 }
 0x2f3   :  { %v1180_v56 = vpop.xlane.xlu1 %1179 }
 0x2fc   :  { %v1183_v8 = vpop.xlane.xlu0 %1182 }
 0x307   :  { %v2338_v14 = vpop.xlane.xlu0 %2337 }
 0x308   :  { %v2346_v24 = vadd.f32 %v2338_v14, %v1177_v29 }
 0x30a   :  { %v2350_v17 = vmul.f32 0.001953125, %v2346_v24 }
 0x30c   :  { %v2341_v50 = vpop.xlane.xlu1 %2340 }
 0x30d   :  { %v2347_v11 = vadd.f32 %v2341_v50, %v1180_v56 }
 0x30f   :  { %v2351_v43 = vmul.f32 0.001953125, %v2347_v11 }
 0x311   :  { %v2335_v16 = vpop.xlane.xlu0 %2334 }
 0x312   :  { %v2345_v44 = vadd.f32 %v2335_v16, %v1174_v4 }
 0x314   :  { %v2349_v49 = vmul.f32 0.001953125, %v2345_v44 }
 0x316   :  { %v2649_v34 = vpack.c.bf16 %v2350_v17, %v2349_v49 }
 0x318   :  { %2650 = vmatprep.subr.bf16.mxu1 %v2649_v34 }
 0x319   :  { %v2344_v57 = vpop.xlane.xlu0 %2343  ;;  %2652 = vmatpush3.bf16.msra.mxu1 %v2649_v34 }
 0x31a   :  { %v2348_v15 = vadd.f32 %v2344_v57, %v1183_v8 }
 0x31c   :  { %v2352_v10 = vmul.f32 0.001953125, %v2348_v15 }
 0x31e   :  { %v2653_v21 = vpack.c.bf16 %v2352_v10, %v2351_v43 }
 0x320   :  { %2654 = vmatprep.subr.bf16.mxu1 %v2653_v21 }
 0x321   :  { %2656 = vmatpush3.bf16.msra.mxu1 %v2653_v21 }
 0x324   :  { %2519 = vmatmul.mubr.msk.f32.vlgmr.msra.gmra.mrb[62].mxu1 %vm2357_vm2, %v2354_v53 }
 0x3f7   :  { %v2520_v33 = vpop.f32.mrb[62].mxu1 }
 0x3f8   :  { %v2436_v52 = vadd.f32 %v2520_v33, %v2356_v58  ;;  %v2430_v45 = vpop.f32.mrb[63].mxu1 }
 0x3f9   :  { %v2431_v31 = vadd.f32 %v2430_v45, %v2355_v42 }
 0x3fa   :  { %2442 = vst.msk [vmem:[%s4743_s7 + $0x8] sm:$0x3] %vm2441_vm3, %v2436_v52 }
 0x3fb   :  { %2440 = vst.msk [vmem:[%s4743_s7] sm:$0xff] %vm2439_vm4, %v2431_v31 }

</bundles_post_ra>
